<compile_context>
chip_gen: v7x
topology: tpu7x:2x2x1
jax: 0.10.0
libtpu: 0.0.40
codegen_flags: <defaults>
</compile_context>

<pallas_src>
import math
from functools import partial

import jax
import jax.numpy as jnp
from jax import lax
from jax.experimental import pallas as pl
from jax.experimental.pallas import tpu as pltpu


# ----------------------------------------------------------------------------
# Fused kernel: RGCN (both node types) + RoPE + biotag head
#               + table encoder + LayerNorm + hidden2tag MLP
# ----------------------------------------------------------------------------

def _hgat_fused_kernel(av2v, ab2v, ab2b, av2b, rev_ref, rep_ref,
                       w_v2v, w_b2v, w_self_v, w_b2b, w_v2b, w_self_b, hb,
                       cosr, sinr, cosp, sinp, swap,
                       btw, btb, wrev, wrep, tb, g, be,
                       w1, b1, w2, b2, w3, b3,
                       crf_o, pair_o):
    f32 = jnp.float32
    x_rev = rev_ref[...]                                   # (Nv, H)
    x_rep = rep_ref[...]                                   # (Np, H)
    Nv, H = x_rev.shape
    Np = x_rep.shape[0]
    R = cosr.shape[0]
    P = cosp.shape[0]
    B = Nv // R

    def dotw(x, w_ref):
        return jnp.dot(x, w_ref[...], preferred_element_type=f32)

    # DGL GraphConv(norm='right', external weight): msg = (A @ X_src) / max(deg, 1)
    # Adjacency arrives as bf16 (exact for 0/1 edges); cast once, then both the
    # degree sum and the message matmul accumulate in f32 (exact parity).
    def agg(a_ref, x):
        a = a_ref[...].astype(f32)
        deg = jnp.maximum(jnp.sum(a, axis=1, keepdims=True), 1.0)
        msg = jnp.dot(a, x, preferred_element_type=f32)
        return msg / deg                                   # exact divide

    bias = hb[...]
    # Per-relation dots accumulated in f32 (no sub-128-lane concat).
    # W_self_* already holds (sl-rel weight + module self-loop weight).
    h_v = jnp.maximum(dotw(agg(av2v, x_rev), w_v2v)
                      + dotw(agg(ab2v, x_rep), w_b2v)
                      + dotw(x_rev, w_self_v) + bias, 0.0)          # (Nv, H)
    h_b = jnp.maximum(dotw(agg(ab2b, x_rep), w_b2b)
                      + dotw(agg(av2b, x_rev), w_v2b)
                      + dotw(x_rep, w_self_b) + bias, 0.0)          # (Np, H)

    # hidden2biotag (CRF emissions) on the un-roped GCN features, both node
    # types at once; output is 128-lane padded so the store is a full-lane vst.
    h_all = jnp.concatenate([h_v, h_b], axis=0)            # sublane concat, cheap
    crf_o[...] = dotw(h_all, btw) + btb[...]

    # RoPE: rope(x) = x*cos + swap(x)*sin_signed.  One merged pair-swap matmul
    # for both node types; cos/sin tables are untiled (T,H) and broadcast per
    # batch via a (B,T,H) view (R and P are multiples of 8, so the reshapes are
    # pure retiling).  The roped features stay in VMEM.
    sw_all = dotw(h_all, swap)                             # (Nv+Np, H)

    def rope(h, swp, cos_ref, sin_ref, T):
        n = h.shape[0]
        nb = n // T
        r = (h.reshape(nb, T, H) * cos_ref[...][None]
             + swp.reshape(nb, T, H) * sin_ref[...][None])
        return r.reshape(n, H)

    rope_v = rope(h_v, sw_all[:Nv], cosr, sinr, R)         # (Nv, H)
    rope_b = rope(h_b, sw_all[Nv:], cosp, sinp, P)         # (Np, H)

    # table_transform(concat(rev_i, rep_j)) == rev_i @ Wrev + rep_j @ Wrep + b
    a = dotw(rope_v, wrev) + tb[...]                       # (Nv, H)
    c = dotw(rope_b, wrep)                                 # (Np, H)

    # Per-batch broadcast-add (R,1,H)+(1,P,H) -> relu -> (R*P,H); static loop
    # over the (small) batch, concatenated along sublanes.  The (B,R,P,H) cross
    # table never leaves VMEM.  Residual with initial_table_input omitted: it is
    # zeros for layers == 1.
    blocks = []
    for bidx in range(B):
        a_b = a[bidx * R:(bidx + 1) * R]
        c_b = c[bidx * P:(bidx + 1) * P]
        cross = jnp.maximum(a_b[:, None, :] + c_b[None, :, :], 0.0)  # (R, P, H)
        blocks.append(cross.reshape(R * P, H))
    x = jnp.concatenate(blocks, axis=0)                    # (B*R*P, H)

    # LayerNorm (eps matches nn.LayerNorm default).
    mu = jnp.mean(x, axis=-1, keepdims=True)
    var = jnp.mean((x - mu) ** 2, axis=-1, keepdims=True)
    y = (x - mu) * lax.rsqrt(var + 1e-5) * g[...] + be[...]

    # hidden2tag MLP, lane-padded to 128 so all stores are full-lane vst.
    h1 = jnp.maximum(dotw(y, w1) + b1[...], 0.0)
    h2 = jnp.maximum(dotw(h1, w2) + b2[...], 0.0)
    pair_o[...] = dotw(h2, w3) + b3[...]


def fused_hgat(graphs, rev, rep, rgcn, swap, cos_r, sin_r, cos_p, sin_p,
               btw, btb, tfg, ln, cls):
    Nv, H = rev.shape
    Np = rep.shape[0]
    R = cos_r.shape[0]
    P = cos_p.shape[0]
    B = Nv // R
    tag_pad = btw.shape[1]
    c1, c2, c3 = cls["w1"].shape[1], cls["w2"].shape[1], cls["w3"].shape[1]

    mm = lambda m, k, n: 2 * m * k * n
    flops = (mm(Nv, Nv, H) + mm(Nv, Np, H) + mm(Np, Np, H) + mm(Np, Nv, H)   # message passing
             + 3 * mm(Nv, H, H) + 3 * mm(Np, H, H)                           # relation weights
             + mm(Nv + Np, H, tag_pad)                                       # biotag head
             + mm(Nv + Np, H, H)                                             # RoPE swap
             + mm(Nv, H, H) + mm(Np, H, H)                                   # table transform
             + mm(B * R * P, H, c1) + mm(B * R * P, c1, c2) + mm(B * R * P, c2, c3))

    inputs = (graphs["v2v"], graphs["b2v"], graphs["b2b"], graphs["v2b"],
              rev, rep,
              rgcn["w_v2v"], rgcn["w_b2v"], rgcn["w_self_v"],
              rgcn["w_b2b"], rgcn["w_v2b"], rgcn["w_self_b"], rgcn["h_bias"],
              cos_r, sin_r, cos_p, sin_p, swap,
              btw, btb,
              tfg["wrev"], tfg["wrep"], tfg["bias"],
              ln["gamma"], ln["beta"],
              cls["w1"], cls["b1"], cls["w2"], cls["b2"], cls["w3"], cls["b3"])
    bytes_accessed = sum(int(a.size) * a.dtype.itemsize for a in inputs)
    bytes_accessed += (Nv + Np) * tag_pad * 4 + B * R * P * c3 * 4

    return pl.pallas_call(
        _hgat_fused_kernel,
        out_shape=(jax.ShapeDtypeStruct((Nv + Np, tag_pad), jnp.float32),
                   jax.ShapeDtypeStruct((B * R * P, c3), jnp.float32)),
        compiler_params=pltpu.CompilerParams(vmem_limit_bytes=32 * 1024 * 1024),
        cost_estimate=pl.CostEstimate(flops=int(flops),
                                      transcendentals=int(B * R * P),
                                      bytes_accessed=int(bytes_accessed)),
    )(*inputs)


# ----------------------------------------------------------------------------
# Plain-JAX glue: RoPE tables and BiLSTM
# ----------------------------------------------------------------------------

def rope_tables(T, H):
    """cos and sign-alternated sin so rope(x) = x*cos + swap(x)*sin_signed."""
    pos = jnp.arange(T, dtype=jnp.float32)[:, None]                   # (T, 1)
    idx = jnp.arange(H // 2, dtype=jnp.float32)
    inv = jnp.power(10000.0, -2.0 * idx / H)                          # (H/2,)
    ang = pos * inv                                                   # (T, H/2)
    cos = jnp.repeat(jnp.cos(ang), 2, axis=-1)                        # (T, H)
    sin = jnp.repeat(jnp.sin(ang), 2, axis=-1)
    sign = jnp.tile(jnp.array([-1.0, 1.0], jnp.float32), H // 2)      # -sin on even lanes
    return cos, sin * sign


def bilstm(params, x):
    """BiLSTM with the input projection hoisted out of the sequential scan."""
    B, _, _ = x.shape
    Hd = params["fwd"]["wh"].shape[0]

    def run(p, zs):
        def cell(carry, z_in):
            h, c = carry
            z = z_in + h @ p["wh"]
            i, f, g, o = jnp.split(z, 4, axis=-1)
            i, f, o = jax.nn.sigmoid(i), jax.nn.sigmoid(f), jax.nn.sigmoid(o)
            g = jnp.tanh(g)
            c = f * c + i * g
            h = o * jnp.tanh(c)
            return (h, c), h
        carry = (jnp.zeros((B, Hd), jnp.float32), jnp.zeros((B, Hd), jnp.float32))
        _, hs = lax.scan(cell, carry, zs)
        return hs

    xs = jnp.swapaxes(x, 0, 1)                                        # (T, B, D)
    zf = xs @ params["fwd"]["wi"] + params["fwd"]["b"]                # one big matmul
    zb = xs[::-1] @ params["bwd"]["wi"] + params["bwd"]["b"]
    hf = run(params["fwd"], zf)
    hb = run(params["bwd"], zb)[::-1]
    return jnp.swapaxes(jnp.concatenate([hf, hb], axis=-1), 0, 1)     # (B, T, H)


# ----------------------------------------------------------------------------
# Parameter init (deterministic, synthetic)
# ----------------------------------------------------------------------------

def xavier(key, shape, gain=1.0):
    fan_in, fan_out = shape[-2], shape[-1]
    a = gain * math.sqrt(6.0 / (fan_in + fan_out))
    return jax.random.uniform(key, shape, jnp.float32, -a, a)


def _pad2(x, rows, cols):
    return jnp.pad(x, ((0, rows - x.shape[0]), (0, cols - x.shape[1])))


def init_params(key, d_bert, H, num_bio):
    ks = jax.random.split(key, 12)
    g_relu = math.sqrt(2.0)
    Hd = H // 2
    TAG_PAD = 128                 # lane-padded biotag head width
    P1 = P2 = P3 = 128            # lane-padded classifier widths (100/50/2 real)

    def lstm_dir(k, D):
        k1, k2 = jax.random.split(k)
        return {"wi": xavier(k1, (D, 4 * Hd)),
                "wh": xavier(k2, (Hd, 4 * Hd)),
                "b": jnp.zeros((4 * Hd,), jnp.float32)}

    # rel order: v2v, b2b, v2b, b2v, sl-rep, sl-rev
    rel_w = xavier(ks[2], (6, H, H), gain=g_relu)
    loop_w = xavier(ks[3], (H, H), gain=g_relu)
    wt = xavier(ks[4], (H, 2 * H))                                    # torch (out, in)

    btw = xavier(ks[5], (H, num_bio))
    w1 = xavier(ks[6], (H, 100))
    w2 = xavier(ks[7], (100, 50))
    w3 = xavier(ks[8], (50, 2))

    joint0 = {
        "lstm": {"fwd": lstm_dir(ks[0], d_bert), "bwd": lstm_dir(ks[1], d_bert)},
        "rgcn": {
            # per-relation weights; the identity self-loop relation (sl-*) and
            # the module self-loop are pre-summed into a single W_self per type
            "w_v2v": rel_w[0], "w_b2v": rel_w[3], "w_self_v": rel_w[5] + loop_w,
            "w_b2b": rel_w[1], "w_v2b": rel_w[2], "w_self_b": rel_w[4] + loop_w,
            "h_bias": jnp.zeros((1, H), jnp.float32),
        },
        "tfg": {"wrev": wt[:, :H].T, "wrep": wt[:, H:].T,
                "bias": jnp.zeros((1, H), jnp.float32)},
        "ln": {"gamma": jnp.ones((1, H), jnp.float32),
               "beta": jnp.zeros((1, H), jnp.float32)},
    }
    params = {
        "joint0": joint0,
        # pairwise swap permutation used for the in-kernel RoPE rotation
        "swap_mat": jnp.kron(jnp.eye(H // 2, dtype=jnp.float32),
                             jnp.array([[0.0, 1.0], [1.0, 0.0]], jnp.float32)),
        "biotag_w": _pad2(btw, H, TAG_PAD),
        "biotag_b": jnp.zeros((1, TAG_PAD), jnp.float32),
        "cls": {
            "w1": _pad2(w1, H, P1), "b1": jnp.zeros((1, P1), jnp.float32),
            "w2": _pad2(w2, P1, P2), "b2": jnp.zeros((1, P2), jnp.float32),
            "w3": _pad2(w3, P2, P3), "b3": jnp.zeros((1, P3), jnp.float32),
        },
    }
    return params


# ----------------------------------------------------------------------------
# CrossModel forward (args.layers == 1, lstm_share_param == True)
# ----------------------------------------------------------------------------

@partial(jax.jit, static_argnames=("num_bio",))
def cross_model_forward(params, review_feature, reply_feature, graphs, num_bio):
    B, R, _ = review_feature.shape
    _, P, _ = reply_feature.shape
    jm = params["joint0"]
    H = jm["rgcn"]["h_bias"].shape[1]

    # --- BiLSTM encoding (shared params) ---
    review_lstm = bilstm(jm["lstm"], review_feature)                  # (B, R, H)
    reply_lstm = bilstm(jm["lstm"], reply_feature)                    # (B, P, H)
    rev = review_lstm.reshape(-1, H)                                  # (B*R, H)
    rep = reply_lstm.reshape(-1, H)                                   # (B*P, H)

    # --- RoPE cos/sin tables (untiled; broadcast per batch inside the kernel) ---
    cos_r, sin_r = rope_tables(R, H)
    cos_p, sin_p = rope_tables(P, H)

    # --- single fused pallas_call for RGCN + RoPE + CRF head + table + LN + MLP ---
    crf_pad, pair_pad = fused_hgat(
        graphs, rev, rep, jm["rgcn"], params["swap_mat"],
        cos_r, sin_r, cos_p, sin_p,
        params["biotag_w"], params["biotag_b"],
        jm["tfg"], jm["ln"], params["cls"])

    Nv = B * R
    review_crf_in = crf_pad[:Nv, :num_bio].reshape(B, R, num_bio)
    reply_crf_in = crf_pad[Nv:, :num_bio].reshape(B, P, num_bio)
    pair_output = pair_pad.reshape(B, R, P, -1)[..., :2]

    return pair_output, review_crf_in, reply_crf_in


# ----------------------------------------------------------------------------
# Main
# ----------------------------------------------------------------------------

if __name__ == "__main__":
    B, R, P = 2, 8, 8            # batch, review sents, reply sents
    D_BERT, H = 32, 32           # bert_feature_dim, hidden_dim
    NUM_BIO = 8                  # synthetic CRF label count

    key = jax.random.PRNGKey(0)
    k_par, k_rev, k_rep, k_graph = jax.random.split(key, 4)

    params = init_params(k_par, D_BERT, H, NUM_BIO)

    # precomputed embedder (BERT) outputs
    review_feature = jax.random.normal(k_rev, (B, R, D_BERT), jnp.float32)
    reply_feature = jax.random.normal(k_rep, (B, P, D_BERT), jnp.float32)

    # synthetic heterograph as dense (dst x src) adjacencies, stored in bf16
    # (exact for 0/1 edges; halves adjacency HBM traffic).  sl-rev / sl-rep are
    # graph self-loops (identity adjacency) folded into W_self inside the kernel.
    Nrev, Nrep = B * R, B * P
    kg = jax.random.split(k_graph, 4)

    def rand_adj(k, nd, ns):
        a = (jax.random.uniform(k, (nd, ns)) < 0.3).astype(jnp.float32)
        a = a.at[:, 0].set(1.0)   # every dst node has >= 1 in-edge
        return a.astype(jnp.bfloat16)

    graphs = {
        "v2v": rand_adj(kg[0], Nrev, Nrev),
        "b2b": rand_adj(kg[1], Nrep, Nrep),
        "v2b": rand_adj(kg[2], Nrep, Nrev),
        "b2v": rand_adj(kg[3], Nrev, Nrep),
    }

    pair_output, review_crf_in, reply_crf_in = cross_model_forward(
        params, review_feature, reply_feature, graphs, num_bio=NUM_BIO)
    jax.block_until_ready((pair_output, review_crf_in, reply_crf_in))

    assert pair_output.shape == (B, R, P, 2)
    assert review_crf_in.shape == (B, R, NUM_BIO)
    assert reply_crf_in.shape == (B, P, NUM_BIO)
    assert bool(jnp.all(jnp.isfinite(pair_output)))
    assert bool(jnp.all(jnp.isfinite(review_crf_in)))
    assert bool(jnp.all(jnp.isfinite(reply_crf_in)))
    print("KERNEL_OK")
</pallas_src>

<mosaic_0001>
module attributes {stable_mosaic.version = 11 : i64} {
  func.func @_hgat_fused_kernel(%arg0: memref<16x16xbf16, #tpu.memory_space<vmem>>, %arg1: memref<16x16xbf16, #tpu.memory_space<vmem>>, %arg2: memref<16x16xbf16, #tpu.memory_space<vmem>>, %arg3: memref<16x16xbf16, #tpu.memory_space<vmem>>, %arg4: memref<16x32xf32, #tpu.memory_space<vmem>>, %arg5: memref<16x32xf32, #tpu.memory_space<vmem>>, %arg6: memref<32x32xf32, #tpu.memory_space<vmem>>, %arg7: memref<32x32xf32, #tpu.memory_space<vmem>>, %arg8: memref<32x32xf32, #tpu.memory_space<vmem>>, %arg9: memref<32x32xf32, #tpu.memory_space<vmem>>, %arg10: memref<32x32xf32, #tpu.memory_space<vmem>>, %arg11: memref<32x32xf32, #tpu.memory_space<vmem>>, %arg12: memref<1x32xf32, #tpu.memory_space<vmem>>, %arg13: memref<8x32xf32, #tpu.memory_space<vmem>>, %arg14: memref<8x32xf32, #tpu.memory_space<vmem>>, %arg15: memref<8x32xf32, #tpu.memory_space<vmem>>, %arg16: memref<8x32xf32, #tpu.memory_space<vmem>>, %arg17: memref<32x32xf32, #tpu.memory_space<vmem>>, %arg18: memref<32x128xf32, #tpu.memory_space<vmem>>, %arg19: memref<1x128xf32, #tpu.memory_space<vmem>>, %arg20: memref<32x32xf32, #tpu.memory_space<vmem>>, %arg21: memref<32x32xf32, #tpu.memory_space<vmem>>, %arg22: memref<1x32xf32, #tpu.memory_space<vmem>>, %arg23: memref<1x32xf32, #tpu.memory_space<vmem>>, %arg24: memref<1x32xf32, #tpu.memory_space<vmem>>, %arg25: memref<32x128xf32, #tpu.memory_space<vmem>>, %arg26: memref<1x128xf32, #tpu.memory_space<vmem>>, %arg27: memref<128x128xf32, #tpu.memory_space<vmem>>, %arg28: memref<1x128xf32, #tpu.memory_space<vmem>>, %arg29: memref<128x128xf32, #tpu.memory_space<vmem>>, %arg30: memref<1x128xf32, #tpu.memory_space<vmem>>, %arg31: memref<32x128xf32, #tpu.memory_space<vmem>>, %arg32: memref<128x128xf32, #tpu.memory_space<vmem>>) attributes {dimension_semantics = [], scalar_prefetch = 0 : i64, scratch_operands = 0 : i64, tpu.core_type = #tpu.core_type<tc>} {
    %c0 = arith.constant 0 : index
    %c0_0 = arith.constant 0 : index
    %0 = vector.load %arg4[%c0, %c0_0] : memref<16x32xf32, #tpu.memory_space<vmem>>, vector<16x32xf32>
    %c0_1 = arith.constant 0 : index
    %c0_2 = arith.constant 0 : index
    %1 = vector.load %arg5[%c0_1, %c0_2] : memref<16x32xf32, #tpu.memory_space<vmem>>, vector<16x32xf32>
    %c0_3 = arith.constant 0 : index
    %c0_4 = arith.constant 0 : index
    %2 = vector.load %arg12[%c0_3, %c0_4] : memref<1x32xf32, #tpu.memory_space<vmem>>, vector<1x32xf32>
    %c0_5 = arith.constant 0 : index
    %c0_6 = arith.constant 0 : index
    %3 = vector.load %arg0[%c0_5, %c0_6] : memref<16x16xbf16, #tpu.memory_space<vmem>>, vector<16x16xbf16>
    %4 = arith.extf %3 : vector<16x16xbf16> to vector<16x16xf32>
    %cst = arith.constant dense<0.000000e+00> : vector<16xf32>
    %5 = vector.multi_reduction <add>, %4, %cst [1] : vector<16x16xf32> to vector<16xf32>
    %6 = vector.shape_cast %5 : vector<16xf32> to vector<16x1xf32>
    %cst_7 = arith.constant 1.000000e+00 : f32
    %7 = vector.broadcast %cst_7 : f32 to vector<16x1xf32>
    %8 = arith.maximumf %6, %7 : vector<16x1xf32>
    %cst_8 = arith.constant dense<0.000000e+00> : vector<16x32xf32>
    %9 = tpu.matmul %4, %0, %cst_8 {dimension_numbers = #tpu.dot_dimension_numbers<[1], [0], [0], [1], [0, 0, 1, 1], [], []>} : vector<16x16xf32>, vector<16x32xf32>, vector<16x32xf32> -> vector<16x32xf32>
    %10 = vector.broadcast %8 : vector<16x1xf32> to vector<16x32xf32>
    %11 = arith.divf %9, %10 : vector<16x32xf32>
    %c0_9 = arith.constant 0 : index
    %c0_10 = arith.constant 0 : index
    %12 = vector.load %arg6[%c0_9, %c0_10] : memref<32x32xf32, #tpu.memory_space<vmem>>, vector<32x32xf32>
    %cst_11 = arith.constant dense<0.000000e+00> : vector<16x32xf32>
    %13 = tpu.matmul %11, %12, %cst_11 {dimension_numbers = #tpu.dot_dimension_numbers<[1], [0], [0], [1], [0, 0, 1, 1], [], []>} : vector<16x32xf32>, vector<32x32xf32>, vector<16x32xf32> -> vector<16x32xf32>
    %c0_12 = arith.constant 0 : index
    %c0_13 = arith.constant 0 : index
    %14 = vector.load %arg1[%c0_12, %c0_13] : memref<16x16xbf16, #tpu.memory_space<vmem>>, vector<16x16xbf16>
    %15 = arith.extf %14 : vector<16x16xbf16> to vector<16x16xf32>
    %cst_14 = arith.constant dense<0.000000e+00> : vector<16xf32>
    %16 = vector.multi_reduction <add>, %15, %cst_14 [1] : vector<16x16xf32> to vector<16xf32>
    %17 = vector.shape_cast %16 : vector<16xf32> to vector<16x1xf32>
    %cst_15 = arith.constant 1.000000e+00 : f32
    %18 = vector.broadcast %cst_15 : f32 to vector<16x1xf32>
    %19 = arith.maximumf %17, %18 : vector<16x1xf32>
    %cst_16 = arith.constant dense<0.000000e+00> : vector<16x32xf32>
    %20 = tpu.matmul %15, %1, %cst_16 {dimension_numbers = #tpu.dot_dimension_numbers<[1], [0], [0], [1], [0, 0, 1, 1], [], []>} : vector<16x16xf32>, vector<16x32xf32>, vector<16x32xf32> -> vector<16x32xf32>
    %21 = vector.broadcast %19 : vector<16x1xf32> to vector<16x32xf32>
    %22 = arith.divf %20, %21 : vector<16x32xf32>
    %c0_17 = arith.constant 0 : index
    %c0_18 = arith.constant 0 : index
    %23 = vector.load %arg7[%c0_17, %c0_18] : memref<32x32xf32, #tpu.memory_space<vmem>>, vector<32x32xf32>
    %cst_19 = arith.constant dense<0.000000e+00> : vector<16x32xf32>
    %24 = tpu.matmul %22, %23, %cst_19 {dimension_numbers = #tpu.dot_dimension_numbers<[1], [0], [0], [1], [0, 0, 1, 1], [], []>} : vector<16x32xf32>, vector<32x32xf32>, vector<16x32xf32> -> vector<16x32xf32>
    %25 = arith.addf %13, %24 : vector<16x32xf32>
    %c0_20 = arith.constant 0 : index
    %c0_21 = arith.constant 0 : index
    %26 = vector.load %arg8[%c0_20, %c0_21] : memref<32x32xf32, #tpu.memory_space<vmem>>, vector<32x32xf32>
    %cst_22 = arith.constant dense<0.000000e+00> : vector<16x32xf32>
    %27 = tpu.matmul %0, %26, %cst_22 {dimension_numbers = #tpu.dot_dimension_numbers<[1], [0], [0], [1], [0, 0, 1, 1], [], []>} : vector<16x32xf32>, vector<32x32xf32>, vector<16x32xf32> -> vector<16x32xf32>
    %28 = arith.addf %25, %27 : vector<16x32xf32>
    %29 = vector.broadcast %2 : vector<1x32xf32> to vector<16x32xf32>
    %30 = arith.addf %28, %29 : vector<16x32xf32>
    %cst_23 = arith.constant 0.000000e+00 : f32
    %31 = vector.broadcast %cst_23 : f32 to vector<16x32xf32>
    %32 = arith.maximumf %30, %31 : vector<16x32xf32>
    %c0_24 = arith.constant 0 : index
    %c0_25 = arith.constant 0 : index
    %33 = vector.load %arg2[%c0_24, %c0_25] : memref<16x16xbf16, #tpu.memory_space<vmem>>, vector<16x16xbf16>
    %34 = arith.extf %33 : vector<16x16xbf16> to vector<16x16xf32>
    %cst_26 = arith.constant dense<0.000000e+00> : vector<16xf32>
    %35 = vector.multi_reduction <add>, %34, %cst_26 [1] : vector<16x16xf32> to vector<16xf32>
    %36 = vector.shape_cast %35 : vector<16xf32> to vector<16x1xf32>
    %cst_27 = arith.constant 1.000000e+00 : f32
    %37 = vector.broadcast %cst_27 : f32 to vector<16x1xf32>
    %38 = arith.maximumf %36, %37 : vector<16x1xf32>
    %cst_28 = arith.constant dense<0.000000e+00> : vector<16x32xf32>
    %39 = tpu.matmul %34, %1, %cst_28 {dimension_numbers = #tpu.dot_dimension_numbers<[1], [0], [0], [1], [0, 0, 1, 1], [], []>} : vector<16x16xf32>, vector<16x32xf32>, vector<16x32xf32> -> vector<16x32xf32>
    %40 = vector.broadcast %38 : vector<16x1xf32> to vector<16x32xf32>
    %41 = arith.divf %39, %40 : vector<16x32xf32>
    %c0_29 = arith.constant 0 : index
    %c0_30 = arith.constant 0 : index
    %42 = vector.load %arg9[%c0_29, %c0_30] : memref<32x32xf32, #tpu.memory_space<vmem>>, vector<32x32xf32>
    %cst_31 = arith.constant dense<0.000000e+00> : vector<16x32xf32>
    %43 = tpu.matmul %41, %42, %cst_31 {dimension_numbers = #tpu.dot_dimension_numbers<[1], [0], [0], [1], [0, 0, 1, 1], [], []>} : vector<16x32xf32>, vector<32x32xf32>, vector<16x32xf32> -> vector<16x32xf32>
    %c0_32 = arith.constant 0 : index
    %c0_33 = arith.constant 0 : index
    %44 = vector.load %arg3[%c0_32, %c0_33] : memref<16x16xbf16, #tpu.memory_space<vmem>>, vector<16x16xbf16>
    %45 = arith.extf %44 : vector<16x16xbf16> to vector<16x16xf32>
    %cst_34 = arith.constant dense<0.000000e+00> : vector<16xf32>
    %46 = vector.multi_reduction <add>, %45, %cst_34 [1] : vector<16x16xf32> to vector<16xf32>
    %47 = vector.shape_cast %46 : vector<16xf32> to vector<16x1xf32>
    %cst_35 = arith.constant 1.000000e+00 : f32
    %48 = vector.broadcast %cst_35 : f32 to vector<16x1xf32>
    %49 = arith.maximumf %47, %48 : vector<16x1xf32>
    %cst_36 = arith.constant dense<0.000000e+00> : vector<16x32xf32>
    %50 = tpu.matmul %45, %0, %cst_36 {dimension_numbers = #tpu.dot_dimension_numbers<[1], [0], [0], [1], [0, 0, 1, 1], [], []>} : vector<16x16xf32>, vector<16x32xf32>, vector<16x32xf32> -> vector<16x32xf32>
    %51 = vector.broadcast %49 : vector<16x1xf32> to vector<16x32xf32>
    %52 = arith.divf %50, %51 : vector<16x32xf32>
    %c0_37 = arith.constant 0 : index
    %c0_38 = arith.constant 0 : index
    %53 = vector.load %arg10[%c0_37, %c0_38] : memref<32x32xf32, #tpu.memory_space<vmem>>, vector<32x32xf32>
    %cst_39 = arith.constant dense<0.000000e+00> : vector<16x32xf32>
    %54 = tpu.matmul %52, %53, %cst_39 {dimension_numbers = #tpu.dot_dimension_numbers<[1], [0], [0], [1], [0, 0, 1, 1], [], []>} : vector<16x32xf32>, vector<32x32xf32>, vector<16x32xf32> -> vector<16x32xf32>
    %55 = arith.addf %43, %54 : vector<16x32xf32>
    %c0_40 = arith.constant 0 : index
    %c0_41 = arith.constant 0 : index
    %56 = vector.load %arg11[%c0_40, %c0_41] : memref<32x32xf32, #tpu.memory_space<vmem>>, vector<32x32xf32>
    %cst_42 = arith.constant dense<0.000000e+00> : vector<16x32xf32>
    %57 = tpu.matmul %1, %56, %cst_42 {dimension_numbers = #tpu.dot_dimension_numbers<[1], [0], [0], [1], [0, 0, 1, 1], [], []>} : vector<16x32xf32>, vector<32x32xf32>, vector<16x32xf32> -> vector<16x32xf32>
    %58 = arith.addf %55, %57 : vector<16x32xf32>
    %59 = vector.broadcast %2 : vector<1x32xf32> to vector<16x32xf32>
    %60 = arith.addf %58, %59 : vector<16x32xf32>
    %cst_43 = arith.constant 0.000000e+00 : f32
    %61 = vector.broadcast %cst_43 : f32 to vector<16x32xf32>
    %62 = arith.maximumf %60, %61 : vector<16x32xf32>
    %63 = tpu.concatenate %32, %62 in 0 : vector<16x32xf32>, vector<16x32xf32> -> vector<32x32xf32>
    %c0_44 = arith.constant 0 : index
    %c0_45 = arith.constant 0 : index
    %64 = vector.load %arg18[%c0_44, %c0_45] : memref<32x128xf32, #tpu.memory_space<vmem>>, vector<32x128xf32>
    %cst_46 = arith.constant dense<0.000000e+00> : vector<32x128xf32>
    %65 = tpu.matmul %63, %64, %cst_46 {dimension_numbers = #tpu.dot_dimension_numbers<[1], [0], [0], [1], [0, 0, 1, 1], [], []>} : vector<32x32xf32>, vector<32x128xf32>, vector<32x128xf32> -> vector<32x128xf32>
    %c0_47 = arith.constant 0 : index
    %c0_48 = arith.constant 0 : index
    %66 = vector.load %arg19[%c0_47, %c0_48] : memref<1x128xf32, #tpu.memory_space<vmem>>, vector<1x128xf32>
    %67 = vector.broadcast %66 : vector<1x128xf32> to vector<32x128xf32>
    %68 = arith.addf %65, %67 : vector<32x128xf32>
    %c0_49 = arith.constant 0 : index
    %c0_50 = arith.constant 0 : index
    %69 = vector.load %arg31[%c0_49, %c0_50] : memref<32x128xf32, #tpu.memory_space<vmem>>, vector<32x128xf32>
    tpu.vector_store %arg31[%c0_49, %c0_50], %68 {strides = array<i32>} : memref<32x128xf32, #tpu.memory_space<vmem>>, vector<32x128xf32>,
    %c0_51 = arith.constant 0 : index
    %c0_52 = arith.constant 0 : index
    %70 = vector.load %arg17[%c0_51, %c0_52] : memref<32x32xf32, #tpu.memory_space<vmem>>, vector<32x32xf32>
    %cst_53 = arith.constant dense<0.000000e+00> : vector<32x32xf32>
    %71 = tpu.matmul %63, %70, %cst_53 {dimension_numbers = #tpu.dot_dimension_numbers<[1], [0], [0], [1], [0, 0, 1, 1], [], []>} : vector<32x32xf32>, vector<32x32xf32>, vector<32x32xf32> -> vector<32x32xf32>
    %72 = vector.extract_strided_slice %71 {offsets = [0, 0], sizes = [16, 32], strides = [1, 1]} : vector<32x32xf32> to vector<16x32xf32>
    %73 = vector.shape_cast %32 : vector<16x32xf32> to vector<2x8x32xf32>
    %c0_54 = arith.constant 0 : index
    %c0_55 = arith.constant 0 : index
    %74 = vector.load %arg13[%c0_54, %c0_55] : memref<8x32xf32, #tpu.memory_space<vmem>>, vector<8x32xf32>
    %75 = vector.shape_cast %74 : vector<8x32xf32> to vector<1x8x32xf32>
    %76 = vector.broadcast %75 : vector<1x8x32xf32> to vector<2x8x32xf32>
    %77 = arith.mulf %73, %76 : vector<2x8x32xf32>
    %78 = vector.shape_cast %72 : vector<16x32xf32> to vector<2x8x32xf32>
    %c0_56 = arith.constant 0 : index
    %c0_57 = arith.constant 0 : index
    %79 = vector.load %arg14[%c0_56, %c0_57] : memref<8x32xf32, #tpu.memory_space<vmem>>, vector<8x32xf32>
    %80 = vector.shape_cast %79 : vector<8x32xf32> to vector<1x8x32xf32>
    %81 = vector.broadcast %80 : vector<1x8x32xf32> to vector<2x8x32xf32>
    %82 = arith.mulf %78, %81 : vector<2x8x32xf32>
    %83 = arith.addf %77, %82 : vector<2x8x32xf32>
    %84 = vector.shape_cast %83 : vector<2x8x32xf32> to vector<16x32xf32>
    %85 = vector.extract_strided_slice %71 {offsets = [16, 0], sizes = [16, 32], strides = [1, 1]} : vector<32x32xf32> to vector<16x32xf32>
    %86 = vector.shape_cast %62 : vector<16x32xf32> to vector<2x8x32xf32>
    %c0_58 = arith.constant 0 : index
    %c0_59 = arith.constant 0 : index
    %87 = vector.load %arg15[%c0_58, %c0_59] : memref<8x32xf32, #tpu.memory_space<vmem>>, vector<8x32xf32>
    %88 = vector.shape_cast %87 : vector<8x32xf32> to vector<1x8x32xf32>
    %89 = vector.broadcast %88 : vector<1x8x32xf32> to vector<2x8x32xf32>
    %90 = arith.mulf %86, %89 : vector<2x8x32xf32>
    %91 = vector.shape_cast %85 : vector<16x32xf32> to vector<2x8x32xf32>
    %c0_60 = arith.constant 0 : index
    %c0_61 = arith.constant 0 : index
    %92 = vector.load %arg16[%c0_60, %c0_61] : memref<8x32xf32, #tpu.memory_space<vmem>>, vector<8x32xf32>
    %93 = vector.shape_cast %92 : vector<8x32xf32> to vector<1x8x32xf32>
    %94 = vector.broadcast %93 : vector<1x8x32xf32> to vector<2x8x32xf32>
    %95 = arith.mulf %91, %94 : vector<2x8x32xf32>
    %96 = arith.addf %90, %95 : vector<2x8x32xf32>
    %97 = vector.shape_cast %96 : vector<2x8x32xf32> to vector<16x32xf32>
    %c0_62 = arith.constant 0 : index
    %c0_63 = arith.constant 0 : index
    %98 = vector.load %arg20[%c0_62, %c0_63] : memref<32x32xf32, #tpu.memory_space<vmem>>, vector<32x32xf32>
    %cst_64 = arith.constant dense<0.000000e+00> : vector<16x32xf32>
    %99 = tpu.matmul %84, %98, %cst_64 {dimension_numbers = #tpu.dot_dimension_numbers<[1], [0], [0], [1], [0, 0, 1, 1], [], []>} : vector<16x32xf32>, vector<32x32xf32>, vector<16x32xf32> -> vector<16x32xf32>
    %c0_65 = arith.constant 0 : index
    %c0_66 = arith.constant 0 : index
    %100 = vector.load %arg22[%c0_65, %c0_66] : memref<1x32xf32, #tpu.memory_space<vmem>>, vector<1x32xf32>
    %101 = vector.broadcast %100 : vector<1x32xf32> to vector<16x32xf32>
    %102 = arith.addf %99, %101 : vector<16x32xf32>
    %c0_67 = arith.constant 0 : index
    %c0_68 = arith.constant 0 : index
    %103 = vector.load %arg21[%c0_67, %c0_68] : memref<32x32xf32, #tpu.memory_space<vmem>>, vector<32x32xf32>
    %cst_69 = arith.constant dense<0.000000e+00> : vector<16x32xf32>
    %104 = tpu.matmul %97, %103, %cst_69 {dimension_numbers = #tpu.dot_dimension_numbers<[1], [0], [0], [1], [0, 0, 1, 1], [], []>} : vector<16x32xf32>, vector<32x32xf32>, vector<16x32xf32> -> vector<16x32xf32>
    %105 = vector.extract_strided_slice %102 {offsets = [0, 0], sizes = [8, 32], strides = [1, 1]} : vector<16x32xf32> to vector<8x32xf32>
    %106 = vector.extract_strided_slice %104 {offsets = [0, 0], sizes = [8, 32], strides = [1, 1]} : vector<16x32xf32> to vector<8x32xf32>
    %107 = vector.shape_cast %105 : vector<8x32xf32> to vector<8x1x32xf32>
    %108 = vector.shape_cast %106 : vector<8x32xf32> to vector<1x8x32xf32>
    %109 = vector.broadcast %107 : vector<8x1x32xf32> to vector<8x8x32xf32>
    %110 = vector.broadcast %108 : vector<1x8x32xf32> to vector<8x8x32xf32>
    %111 = arith.addf %109, %110 : vector<8x8x32xf32>
    %cst_70 = arith.constant 0.000000e+00 : f32
    %112 = vector.broadcast %cst_70 : f32 to vector<8x8x32xf32>
    %113 = arith.maximumf %111, %112 : vector<8x8x32xf32>
    %114 = vector.shape_cast %113 : vector<8x8x32xf32> to vector<64x32xf32>
    %115 = vector.extract_strided_slice %102 {offsets = [8, 0], sizes = [8, 32], strides = [1, 1]} : vector<16x32xf32> to vector<8x32xf32>
    %116 = vector.extract_strided_slice %104 {offsets = [8, 0], sizes = [8, 32], strides = [1, 1]} : vector<16x32xf32> to vector<8x32xf32>
    %117 = vector.shape_cast %115 : vector<8x32xf32> to vector<8x1x32xf32>
    %118 = vector.shape_cast %116 : vector<8x32xf32> to vector<1x8x32xf32>
    %119 = vector.broadcast %117 : vector<8x1x32xf32> to vector<8x8x32xf32>
    %120 = vector.broadcast %118 : vector<1x8x32xf32> to vector<8x8x32xf32>
    %121 = arith.addf %119, %120 : vector<8x8x32xf32>
    %cst_71 = arith.constant 0.000000e+00 : f32
    %122 = vector.broadcast %cst_71 : f32 to vector<8x8x32xf32>
    %123 = arith.maximumf %121, %122 : vector<8x8x32xf32>
    %124 = vector.shape_cast %123 : vector<8x8x32xf32> to vector<64x32xf32>
    %125 = tpu.concatenate %114, %124 in 0 : vector<64x32xf32>, vector<64x32xf32> -> vector<128x32xf32>
    %cst_72 = arith.constant dense<0.000000e+00> : vector<128xf32>
    %126 = vector.multi_reduction <add>, %125, %cst_72 [1] : vector<128x32xf32> to vector<128xf32>
    %127 = vector.shape_cast %126 : vector<128xf32> to vector<128x1xf32>
    %cst_73 = arith.constant 3.200000e+01 : f32
    %128 = vector.broadcast %cst_73 : f32 to vector<128x1xf32>
    %129 = arith.divf %127, %128 : vector<128x1xf32>
    %130 = vector.broadcast %129 : vector<128x1xf32> to vector<128x32xf32>
    %131 = arith.subf %125, %130 : vector<128x32xf32>
    %132 = arith.mulf %131, %131 : vector<128x32xf32>
    %cst_74 = arith.constant dense<0.000000e+00> : vector<128xf32>
    %133 = vector.multi_reduction <add>, %132, %cst_74 [1] : vector<128x32xf32> to vector<128xf32>
    %134 = vector.shape_cast %133 : vector<128xf32> to vector<128x1xf32>
    %cst_75 = arith.constant 3.200000e+01 : f32
    %135 = vector.broadcast %cst_75 : f32 to vector<128x1xf32>
    %136 = arith.divf %134, %135 : vector<128x1xf32>
    %137 = vector.broadcast %129 : vector<128x1xf32> to vector<128x32xf32>
    %138 = arith.subf %125, %137 : vector<128x32xf32>
    %cst_76 = arith.constant 9.99999974E-6 : f32
    %139 = vector.broadcast %cst_76 : f32 to vector<128x1xf32>
    %140 = arith.addf %136, %139 : vector<128x1xf32>
    %141 = math.rsqrt %140 : vector<128x1xf32>
    %142 = vector.broadcast %141 : vector<128x1xf32> to vector<128x32xf32>
    %143 = arith.mulf %138, %142 : vector<128x32xf32>
    %c0_77 = arith.constant 0 : index
    %c0_78 = arith.constant 0 : index
    %144 = vector.load %arg23[%c0_77, %c0_78] : memref<1x32xf32, #tpu.memory_space<vmem>>, vector<1x32xf32>
    %145 = vector.broadcast %144 : vector<1x32xf32> to vector<128x32xf32>
    %146 = arith.mulf %143, %145 : vector<128x32xf32>
    %c0_79 = arith.constant 0 : index
    %c0_80 = arith.constant 0 : index
    %147 = vector.load %arg24[%c0_79, %c0_80] : memref<1x32xf32, #tpu.memory_space<vmem>>, vector<1x32xf32>
    %148 = vector.broadcast %147 : vector<1x32xf32> to vector<128x32xf32>
    %149 = arith.addf %146, %148 : vector<128x32xf32>
    %c0_81 = arith.constant 0 : index
    %c0_82 = arith.constant 0 : index
    %150 = vector.load %arg25[%c0_81, %c0_82] : memref<32x128xf32, #tpu.memory_space<vmem>>, vector<32x128xf32>
    %cst_83 = arith.constant dense<0.000000e+00> : vector<128x128xf32>
    %151 = tpu.matmul %149, %150, %cst_83 {dimension_numbers = #tpu.dot_dimension_numbers<[1], [0], [0], [1], [0, 0, 1, 1], [], []>} : vector<128x32xf32>, vector<32x128xf32>, vector<128x128xf32> -> vector<128x128xf32>
    %c0_84 = arith.constant 0 : index
    %c0_85 = arith.constant 0 : index
    %152 = vector.load %arg26[%c0_84, %c0_85] : memref<1x128xf32, #tpu.memory_space<vmem>>, vector<1x128xf32>
    %153 = vector.broadcast %152 : vector<1x128xf32> to vector<128x128xf32>
    %154 = arith.addf %151, %153 : vector<128x128xf32>
    %cst_86 = arith.constant 0.000000e+00 : f32
    %155 = vector.broadcast %cst_86 : f32 to vector<128x128xf32>
    %156 = arith.maximumf %154, %155 : vector<128x128xf32>
    %c0_87 = arith.constant 0 : index
    %c0_88 = arith.constant 0 : index
    %157 = vector.load %arg27[%c0_87, %c0_88] : memref<128x128xf32, #tpu.memory_space<vmem>>, vector<128x128xf32>
    %cst_89 = arith.constant dense<0.000000e+00> : vector<128x128xf32>
    %158 = tpu.matmul %156, %157, %cst_89 {dimension_numbers = #tpu.dot_dimension_numbers<[1], [0], [0], [1], [0, 0, 1, 1], [], []>} : vector<128x128xf32>, vector<128x128xf32>, vector<128x128xf32> -> vector<128x128xf32>
    %c0_90 = arith.constant 0 : index
    %c0_91 = arith.constant 0 : index
    %159 = vector.load %arg28[%c0_90, %c0_91] : memref<1x128xf32, #tpu.memory_space<vmem>>, vector<1x128xf32>
    %160 = vector.broadcast %159 : vector<1x128xf32> to vector<128x128xf32>
    %161 = arith.addf %158, %160 : vector<128x128xf32>
    %cst_92 = arith.constant 0.000000e+00 : f32
    %162 = vector.broadcast %cst_92 : f32 to vector<128x128xf32>
    %163 = arith.maximumf %161, %162 : vector<128x128xf32>
    %c0_93 = arith.constant 0 : index
    %c0_94 = arith.constant 0 : index
    %164 = vector.load %arg29[%c0_93, %c0_94] : memref<128x128xf32, #tpu.memory_space<vmem>>, vector<128x128xf32>
    %cst_95 = arith.constant dense<0.000000e+00> : vector<128x128xf32>
    %165 = tpu.matmul %163, %164, %cst_95 {dimension_numbers = #tpu.dot_dimension_numbers<[1], [0], [0], [1], [0, 0, 1, 1], [], []>} : vector<128x128xf32>, vector<128x128xf32>, vector<128x128xf32> -> vector<128x128xf32>
    %c0_96 = arith.constant 0 : index
    %c0_97 = arith.constant 0 : index
    %166 = vector.load %arg30[%c0_96, %c0_97] : memref<1x128xf32, #tpu.memory_space<vmem>>, vector<1x128xf32>
    %167 = vector.broadcast %166 : vector<1x128xf32> to vector<128x128xf32>
    %168 = arith.addf %165, %167 : vector<128x128xf32>
    %c0_98 = arith.constant 0 : index
    %c0_99 = arith.constant 0 : index
    %169 = vector.load %arg32[%c0_98, %c0_99] : memref<128x128xf32, #tpu.memory_space<vmem>>, vector<128x128xf32>
    tpu.vector_store %arg32[%c0_98, %c0_99], %168 {strides = array<i32>} : memref<128x128xf32, #tpu.memory_space<vmem>>, vector<128x128xf32>,
    return
  }
}

</mosaic_0001>

<bundles_post_ra>
// kernel: custom-call.6
= control target key start
LH: loop header
LB: loop body
LE: loop exit
PB: predicated region body
PF: predicated region fallthrough
CT: control target
= control target key end

     0   :  { %s6_s0 = inlined_call_operand.vmem [shape: bf16[2,16], index: 0, kind: output, shape index: {}]  }

// kernel: custom-call.7
= control target key start
LH: loop header
LB: loop body
LE: loop exit
PB: predicated region body
PF: predicated region fallthrough
CT: control target
= control target key end

     0   :  { %s6_s0 = inlined_call_operand.vmem [shape: f32[2,16], index: 0, kind: output, shape index: {}]  }

// kernel: tile.10
= control target key start
LH: loop header
LB: loop body
LE: loop exit
PB: predicated region body
PF: predicated region fallthrough
CT: control target
= control target key end

     0   :  { %s28_s0 = inlined_call_operand.vmem [shape: f32[2], index: 0, kind: input, shape index: {}]   ;;  %s29_s1 = inlined_call_operand.vmem [shape: f32[16,2], index: 1, kind: output, shape index: {}]  }
   0x1   :  { %v4_v0 = vld [vmem:[%s28_s0] ss:$0 sm:$0xff] }
   0x2   :  { %5 = vst [vmem:[%s29_s1] sm:$0xff] %v4_v0  ;;  %8 = vst [vmem:[%s29_s1 + $0x8] sm:$0xff] %v4_v0 }

// kernel: mul.57
= control target key start
LH: loop header
LB: loop body
LE: loop exit
PB: predicated region body
PF: predicated region fallthrough
CT: control target
= control target key end

     0   :  { %s131_s10 = smov 30   ;;  %s132_s11 = smov 26   ;;  %vm3_vm0 = vcmask 15360   ;;  %vm9_vm1 = vcmask 261360   ;;  %vm15_vm2 = vcmask 244960   ;;  %vm21_vm3 = vcmask 228560   ;;  %s207_s0 = inlined_call_operand.vmem [shape: f32[16,2], index: 0, kind: input, shape index: {}]   ;;  %s208_s1 = inlined_call_operand.vmem [shape: f32[32], index: 1, kind: output, shape index: {}]  }
   0x1   :  { %v101_v0 = vld [vmem:[%s207_s0 + $0xf] sm:$0x1]   ;;  %v103_v1 = vld [vmem:[%s207_s0 + $0xd] sm:$0x1]   ;;  %v102_v2 = vld [vmem:[%s207_s0 + $0xe] sm:$0x1]  }
   0x2   :  { %7 = vrot.lane.b32.xlu0 %v101_v0, %s131_s10  ;;  %19 = vrot.lane.b32.xlu1 %v103_v1, %s132_s11  ;;  %v104_v3 = vld [vmem:[%s207_s0 + $0xc] sm:$0x1]   ;;  %s133_s16 = smov 28   ;;  %s134_s17 = smov 24   ;;  %v105_v4 = vld [vmem:[%s207_s0 + $0xb] sm:$0x1]  }
   0x3   :  { %v106_v5 = vld [vmem:[%s207_s0 + $0xa] sm:$0x1]   ;;  %v2_v6 = vld [vmem:[%s207_s0] sm:$0x1]   ;;  %s135_s24 = smov 22   ;;  %s136_s25 = smov 20  }
   0x4   :  { %4 = vst.msk [vmem:[#allocation0] sm:$0x1] %vm3_vm0, %v2_v6   ;;  %v107_v7 = vld [vmem:[%s207_s0 + $0x9] sm:$0x1]   ;;  %v108_v8 = vld [vmem:[%s207_s0 + $0x8] sm:$0x1]  }
   0x5   :  { %s137_s30 = smov 18   ;;  %s138_s2 = smov 16   ;;  %v109_v9 = vld [vmem:[%s207_s0 + $0x7] sm:$0x1]   ;;  %v110_v10 = vld [vmem:[%s207_s0 + $0x6] sm:$0x1]  }
   0x6   :  { %13 = vrot.lane.b32.xlu0 %v102_v2, %s133_s16  ;;  %25 = vrot.lane.b32.xlu1 %v104_v3, %s134_s17  ;;  %s139_s7 = smov 14   ;;  %s140_s8 = smov 12   ;;  %v111_v11 = vld [vmem:[%s207_s0 + $0x5] sm:$0x1]   ;;  %v112_v12 = vld [vmem:[%s207_s0 + $0x4] sm:$0x1]  }
   0x7   :  { %s141_s13 = smov 10   ;;  %s142_s14 = smov 8   ;;  %v113_v13 = vld [vmem:[%s207_s0 + $0x3] sm:$0x1]   ;;  %v114_v14 = vld [vmem:[%s207_s0 + $0x2] sm:$0x1]  }
   0x8   :  { %s143_s19 = smov 6   ;;  %s144_s20 = smov 4   ;;  %v115_v15 = vld [vmem:[%s207_s0 + $0x1] sm:$0x1]   ;;  %vm27_vm4 = vcmask 212160   ;;  %vm33_vm5 = vcmask 195760  }
   0x9   :  { %s145_s0 = smov 2   ;;  %vm39_vm6 = vcmask 179360   ;;  %vm45_vm7 = vcmask 162960   ;;  %vm51_vm8 = vcmask 146560   ;;  %vm57_vm9 = vcmask 130160  }
   0xa   :  { %31 = vrot.lane.b32.xlu0 %v105_v4, %s135_s24  ;;  %37 = vrot.lane.b32.xlu1 %v106_v5, %s136_s25  ;;  %vm63_vm10 = vcmask 113760   ;;  %vm69_vm11 = vcmask 97360   ;;  %vm75_vm12 = vcmask 80960   ;;  %vm81_vm13 = vcmask 64560  }
   0xb   :  { %vm87_vm14 = vcmask 48160   ;;  %vm93_vm15 = vcmask 31760  }
   0xe   :  { %43 = vrot.lane.b32.xlu0 %v107_v7, %s137_s30  ;;  %49 = vrot.lane.b32.xlu1 %v108_v8, %s138_s2 }
  0x12   :  { %55 = vrot.lane.b32.xlu0 %v109_v9, %s139_s7  ;;  %61 = vrot.lane.b32.xlu1 %v110_v10, %s140_s8 }
  0x16   :  { %67 = vrot.lane.b32.xlu0 %v111_v11, %s141_s13  ;;  %73 = vrot.lane.b32.xlu1 %v112_v12, %s142_s14 }
  0x1a   :  { %79 = vrot.lane.b32.xlu0 %v113_v13, %s143_s19  ;;  %85 = vrot.lane.b32.xlu1 %v114_v14, %s144_s20 }
  0x1e   :  { %91 = vrot.lane.b32.xlu0 %v115_v15, %s145_s0 }
  0x74   :  { %v8_v16 = vpop.permute.xlu0 %7   ;;  %v20_v17 = vpop.permute.xlu1 %19  }
  0x75   :  { %10 = vst.msk [vmem:[#allocation0] sm:$0x1] %vm9_vm1, %v8_v16  }
  0x78   :  { %v14_v18 = vpop.permute.xlu0 %13   ;;  %v26_v19 = vpop.permute.xlu1 %25  }
  0x79   :  { %16 = vst.msk [vmem:[#allocation0] sm:$0x1] %vm15_vm2, %v14_v18  }
  0x7a   :  { %22 = vst.msk [vmem:[#allocation0] sm:$0x1] %vm21_vm3, %v20_v17  }
  0x7b   :  { %28 = vst.msk [vmem:[#allocation0] sm:$0x1] %vm27_vm4, %v26_v19  }
  0x7c   :  { %v32_v20 = vpop.permute.xlu0 %31   ;;  %v38_v21 = vpop.permute.xlu1 %37  }
  0x7d   :  { %34 = vst.msk [vmem:[#allocation0] sm:$0x1] %vm33_vm5, %v32_v20  }
  0x7e   :  { %40 = vst.msk [vmem:[#allocation0] sm:$0x1] %vm39_vm6, %v38_v21  }
  0x80   :  { %v44_v22 = vpop.permute.xlu0 %43   ;;  %v50_v23 = vpop.permute.xlu1 %49  }
  0x81   :  { %46 = vst.msk [vmem:[#allocation0] sm:$0x1] %vm45_vm7, %v44_v22  }
  0x82   :  { %52 = vst.msk [vmem:[#allocation0] sm:$0x1] %vm51_vm8, %v50_v23  }
  0x84   :  { %v56_v24 = vpop.permute.xlu0 %55   ;;  %v62_v25 = vpop.permute.xlu1 %61  }
  0x85   :  { %58 = vst.msk [vmem:[#allocation0] sm:$0x1] %vm57_vm9, %v56_v24  }
  0x86   :  { %64 = vst.msk [vmem:[#allocation0] sm:$0x1] %vm63_vm10, %v62_v25  }
  0x88   :  { %v68_v26 = vpop.permute.xlu0 %67   ;;  %v74_v27 = vpop.permute.xlu1 %73  }
  0x89   :  { %70 = vst.msk [vmem:[#allocation0] sm:$0x1] %vm69_vm11, %v68_v26  }
  0x8a   :  { %76 = vst.msk [vmem:[#allocation0] sm:$0x1] %vm75_vm12, %v74_v27  }
  0x8c   :  { %v80_v28 = vpop.permute.xlu0 %79   ;;  %v86_v29 = vpop.permute.xlu1 %85  }
  0x8d   :  { %82 = vst.msk [vmem:[#allocation0] sm:$0x1] %vm81_vm13, %v80_v28  }
  0x8e   :  { %88 = vst.msk [vmem:[#allocation0] sm:$0x1] %vm87_vm14, %v86_v29  }
  0x90   :  { %v92_v30 = vpop.permute.xlu0 %91  }
  0x91   :  { %94 = vst.msk [vmem:[#allocation0] sm:$0x1] %vm93_vm15, %v92_v30  }
  0x98   :  { %v98_v31 = vld [vmem:[#allocation0] sm:$0x1] }
  0x99   :  { %100 = vst [vmem:[%s208_s1] sm:$0x1] %v98_v31 }

// kernel: cross_model_forward.1
= control target key start
LH: loop header
LB: loop body
LE: loop exit
PB: predicated region body
PF: predicated region fallthrough
CT: control target
= control target key end

     0   :  { %s3326_s3 = smov 5   ;;  %s3327_s7 = smov 1   ;;  %vm142_vm0 = vcmask 130048   ;;  %vm341_vm1 = vcmask 261120   ;;  %s3949_s0 = inlined_call_operand.smem [shape: u32[33], index: -1, kind: input, shape index: {}] }
   0x1   :  { %s2517_s6 = sld [smem:[%s3949_s0 + %s3326_s3]]   ;;  %s3328_s11 = smov 2  }
   0x2   :  { %s2513_s10 = sld [smem:[%s3949_s0 + %s3327_s7]]   ;;  %s3329_s15 = smov 4  }
   0x3   :  { %s2514_s14 = sld [smem:[%s3949_s0 + %s3328_s11]]   ;;  %s3330_s22 = smov 3  }
   0x4   :  { %s2516_s18 = sld [smem:[%s3949_s0 + %s3329_s15]]   ;;  %s3331_s26 = smov 7  }
   0x5   :  { %s1_s21 = sld [smem:[%s3949_s0]]   ;;  %s3332_s30 = smov 6  }
   0x6   :  { %s2515_s25 = sld [smem:[%s3949_s0 + %s3330_s22]]   ;;  %s3333_s4 = smov 10  }
   0x7   :  { %v3382_v0 = vld [vmem:[%s2517_s6] sm:$0xff]  ;;  %v3384_v1 = vld [vmem:[%s2517_s6 + $0x8] sm:$0xff]  ;;  %s2519_s29 = sld [smem:[%s3949_s0 + %s3331_s26]]   ;;  %s3334_s8 = smov 9  }
   0x8   :  { %v2606_v2 = vld [vmem:[%s2513_s10] sm:$0xff]   ;;  %v3073_v3 = vpack.c.bf16 %v3384_v1, %v3382_v0  ;;  %s3416_s3 = sld [smem:[%s3949_s0 + %s3332_s30]]   ;;  %s3335_s12 = smov 8  }
   0x9   :  { %v2607_v4 = vunpack.c.l.bf16 %v2606_v2  ;;  %v2610_v5 = vld [vmem:[%s2514_s14] sm:$0xff]   ;;  %v2608_v8 = vunpack.c.h.bf16 %v2606_v2  ;;  %s2522_s7 = sld [smem:[%s3949_s0 + %s3333_s4]]   ;;  %s3336_s16 = smov 11  }
   0xa   :  { %v3388_v6 = vld [vmem:[%s2516_s18] sm:$0xff]  ;;  %v3390_v7 = vld [vmem:[%s2516_s18 + $0x8] sm:$0xff]  ;;  %3074 = vmatprep.subr.bf16.mxu1 %v3073_v3  ;;  %v2611_v12 = vunpack.c.l.bf16 %v2610_v5  ;;  %v2612_v17 = vunpack.c.h.bf16 %v2610_v5  ;;  %s3428_s11 = sld [smem:[%s3949_s0 + %s3334_s8]]   ;;  %s3337_s20 = smov 18  }
   0xb   :  { %2792 = vmatprep.mubr.msk.f32.mxu1 %vm142_vm0, %v2607_v4  ;;  %v3069_v9 = vpack.c.bf16 %v3390_v7, %v3388_v6  ;;  %v2602_v10 = vld [vmem:[%s1_s21] sm:$0xff]   ;;  %v244_v11 = vsel %vm142_vm0, %v2607_v4, 0.0  ;;  %3076 = vmatpush3.bf16.msra.mxu1 %v3073_v3  ;;  %v247_v19 = vsel %vm142_vm0, %v2608_v8, 0.0  ;;  %s3439_s15 = sld [smem:[%s3949_s0 + %s3335_s12]]   ;;  %s3338_s24 = smov 17  }
   0xc   :  { %v2603_v13 = vunpack.c.l.bf16 %v2602_v10  ;;  %v2614_v14 = vld [vmem:[%s2515_s25] sm:$0xff]   ;;  %245 = vadd.xlane.f32.xlu0 %v244_v11  ;;  %3102 = vmatprep.subr.bf16.mxu1 %v3073_v3  ;;  %v2604_v15 = vunpack.c.h.bf16 %v2602_v10  ;;  %v605_v24 = vsel %vm142_vm0, %v2611_v12, 0.0  ;;  %v608_v25 = vsel %vm142_vm0, %v2612_v17, 0.0  ;;  %s3446_s19 = sld [smem:[%s3949_s0 + %s3336_s16]]   ;;  %s3339_s28 = smov 12  }
   0xd   :  { %3070 = vmatprep.subr.bf16.mxu0 %v3069_v9  ;;  %v2615_v16 = vunpack.c.l.bf16 %v2614_v14  ;;  %v2616_v20 = vunpack.c.h.bf16 %v2614_v14  ;;  %v337_v26 = vld [vmem:[%s2519_s29] sm:$0xff]  ;;  %v338_v27 = vld [vmem:[%s2519_s29 + $0x8] sm:$0xff]  ;;  %v339_v29 = vld [vmem:[%s2519_s29 + $0x10] sm:$0xff]  ;;  %s3454_s23 = sld [smem:[%s3949_s0 + %s3337_s20]]   ;;  %s3340_s2 = smov 20  }
   0xe   :  { %3072 = vmatpush3.bf16.msra.mxu0 %v3069_v9  ;;  %2785 = vmatprep.mubr.msk.f32.mxu0 %vm142_vm0, %v2603_v13  ;;  %v143_v22 = vsel %vm142_vm0, %v2603_v13, 0.0  ;;  %v146_v23 = vsel %vm142_vm0, %v2604_v15, 0.0  ;;  %v3077_v28 = vpack.c.bf16 %v338_v27, %v337_v26  ;;  %v340_v30 = vld [vmem:[%s2519_s29 + $0x18] sm:$0xff]  ;;  %v236_v32 = vld [vmem:[%s3416_s3] sm:$0xff]  ;;  %v237_v33 = vld [vmem:[%s3416_s3 + $0x8] sm:$0xff]  ;;  %s2529_s27 = sld [smem:[%s3949_s0 + %s3338_s24]]   ;;  %s3341_s6 = smov 21  }
   0xf   :  { %2793 = vmatmul.mubr.msk.f32.vlgmr.msra.gmra.mrb[0].mxu1 %vm142_vm0, %v2608_v8  ;;  %v706_v18 = vsel %vm142_vm0, %v2615_v16, 0.0  ;;  %v709_v21 = vsel %vm142_vm0, %v2616_v20, 0.0  ;;  %v3081_v31 = vpack.c.bf16 %v340_v30, %v339_v29  ;;  %v799_v34 = vld [vmem:[%s2522_s7] sm:$0xff]  ;;  %v3423_v35 = vpack.c.bf16 %v237_v33, %v236_v32  ;;  %v800_v36 = vld [vmem:[%s2522_s7 + $0x8] sm:$0xff]  ;;  %v801_v38 = vld [vmem:[%s2522_s7 + $0x10] sm:$0xff]  ;;  %s2524_s1 = sld [smem:[%s3949_s0 + %s3339_s28]]   ;;  %s3342_s10 = smov 19  }
  0x10   :  { %3104 = vmatpush3.bf16.msra.mxu1 %v3073_v3  ;;  %2832 = vmatprep.mubr.msk.f32.mxu1 %vm142_vm0, %v2611_v12  ;;  %v3109_v37 = vpack.c.bf16 %v800_v36, %v799_v34  ;;  %v802_v39 = vld [vmem:[%s2522_s7 + $0x18] sm:$0xff]  ;;  %v698_v41 = vld [vmem:[%s3428_s11] sm:$0xff]  ;;  %v699_v42 = vld [vmem:[%s3428_s11 + $0x8] sm:$0xff]  ;;  %s2532_s5 = sld [smem:[%s3949_s0 + %s3340_s2]]   ;;  %s3343_s14 = smov 31  }
  0x11   :  { %3106 = vmatprep.subr.bf16.mxu1 %v3069_v9  ;;  %2786 = vmatmul.mubr.msk.f32.vlgmr.msra.gmra.mrb[0].mxu0 %vm142_vm0, %v2604_v15  ;;  %v3113_v40 = vpack.c.bf16 %v802_v39, %v801_v38  ;;  %v3433_v43 = vpack.c.bf16 %v699_v42, %v698_v41  ;;  %v238_v62 = vld [vmem:[%s3416_s3 + $0x10] sm:$0xff]  ;;  %v239_v63 = vld [vmem:[%s3416_s3 + $0x18] sm:$0xff]  ;;  %v504_v14 = vld [vmem:[%s3439_s15] sm:$0xff]  ;;  %s2533_s9 = sld [smem:[%s3949_s0 + %s3341_s6]]   ;;  %s3344_s18 = smov 13  }
  0x12   :  { %707 = vadd.xlane.f32.xlu1 %v706_v18  ;;  %248 = vadd.xlane.f32.xlu0 %v247_v19  ;;  %v3089_v11 = vpack.c.bf16 %v239_v63, %v238_v62  ;;  %v505_v15 = vld [vmem:[%s3439_s15 + $0x8] sm:$0xff]  ;;  %v700_v26 = vld [vmem:[%s3428_s11 + $0x10] sm:$0xff]  ;;  %v701_v27 = vld [vmem:[%s3428_s11 + $0x18] sm:$0xff]  ;;  %s2531_s13 = sld [smem:[%s3949_s0 + %s3342_s10]]   ;;  %s3345_s22 = smov 14  }
  0x13   :  { %2833 = vmatmul.mubr.msk.f32.vlgmr.msra.gmra.mrb[2].mxu1 %vm142_vm0, %v2612_v17  ;;  %3078 = vmatprep.subr.bf16.mxu0 %v3077_v28  ;;  %v3093_v18 = vpack.c.bf16 %v505_v15, %v504_v14  ;;  %v965_v32 = vld [vmem:[%s3446_s19] sm:$0xff]  ;;  %v3121_v33 = vpack.c.bf16 %v701_v27, %v700_v26  ;;  %v966_v34 = vld [vmem:[%s3446_s19 + $0x8] sm:$0xff]  ;;  %v967_v41 = vld [vmem:[%s3446_s19 + $0x10] sm:$0xff]  ;;  %s2543_s17 = sld [smem:[%s3949_s0 + %s3343_s14]]   ;;  %s3346_s26 = smov 15  }
  0x14   :  { %3108 = vmatpush3.bf16.msra.mxu1 %v3069_v9  ;;  %2839 = vmatprep.mubr.msk.f32.mxu1 %vm142_vm0, %v2615_v16  ;;  %v1057_v36 = vld [vmem:[%s3454_s23 + $0x8] sm:$0xff]  ;;  %v3125_v38 = vpack.c.bf16 %v966_v34, %v965_v32  ;;  %v968_v42 = vld [vmem:[%s3446_s19 + $0x18] sm:$0xff]  ;;  %s2525_s21 = sld [smem:[%s3949_s0 + %s3344_s18]]   ;;  %s3347_s30 = smov 16  }
  0x15   :  { %3080 = vmatpush3.bf16.msra.mxu0 %v3077_v28  ;;  %3110 = vmatprep.subr.bf16.mxu1 %v3109_v37  ;;  %s2526_s25 = sld [smem:[%s3949_s0 + %s3345_s22]]   ;;  %s3348_s4 = smov 22  }
  0x16   :  { %710 = vadd.xlane.f32.xlu1 %v709_v21  ;;  %144 = vadd.xlane.f32.xlu0 %v143_v22  ;;  %v506_v21 = vld [vmem:[%s3439_s15 + $0x10] sm:$0xff]  ;;  %v507_v22 = vld [vmem:[%s3439_s15 + $0x18] sm:$0xff]  ;;  %v1273_v63 = vld [vmem:[%s2532_s5] sm:$0xff]  ;;  %s2527_s29 = sld [smem:[%s3949_s0 + %s3346_s26]]   ;;  %s3350_s8 = smov 25  }
  0x17   :  { %2840 = vmatmul.mubr.msk.f32.vlgmr.msra.gmra.mrb[4].mxu1 %vm142_vm0, %v2616_v20  ;;  %3082 = vmatprep.subr.bf16.mxu0 %v3081_v31  ;;  %s2528_s3 = sld [smem:[%s3949_s0 + %s3347_s30]]   ;;  %s3351_s12 = smov 27  }
  0x18   :  { %3112 = vmatpush3.bf16.msra.mxu1 %v3109_v37  ;;  %v2566_v15 = vld [vmem:[%s2531_s13] ss:$0 sm:$0xff]  ;;  %s2534_s7 = sld [smem:[%s3949_s0 + %s3348_s4]]   ;;  %s3352_s16 = smov 23  }
  0x19   :  { %3084 = vmatpush3.bf16.msra.mxu0 %v3081_v31  ;;  %3114 = vmatprep.subr.bf16.mxu1 %v3113_v40  ;;  %v3097_v31 = vpack.c.bf16 %v507_v22, %v506_v21  ;;  %s2537_s11 = sld [smem:[%s3949_s0 + %s3350_s8]]   ;;  %s3353_s20 = smov 24  }
  0x1a   :  { %147 = vadd.xlane.f32.xlu1 %v146_v23  ;;  %606 = vadd.xlane.f32.xlu0 %v605_v24  ;;  %s3806_s15 = sld [smem:[%s3949_s0 + %s3351_s12]]   ;;  %s3354_s24 = smov 29  }
  0x1b   :  { %3086 = vmatprep.subr.bf16.mxu0 %v3423_v35  ;;  %s2535_s19 = sld [smem:[%s3949_s0 + %s3352_s16]]   ;;  %s3355_s28 = smov 26  }
  0x1c   :  { %3116 = vmatpush3.bf16.msra.mxu1 %v3113_v40  ;;  %v1265_v32 = vld [vmem:[%s2527_s29] sm:$0xff]  ;;  %s3356_s2 = smov 28   ;;  %s3357_s6 = smov 30  }
  0x1d   :  { %3118 = vmatprep.subr.bf16.mxu1 %v3433_v43  ;;  %s3358_s10 = smov 32  }
  0x1e   :  { %609 = vadd.xlane.f32.xlu1 %v608_v25  ;;  %s3931_s13 = sld [smem:[%s3949_s0 + %s3358_s10]]  }
  0x99   :  { %v246_v44 = vpop.xlane.xlu0 %245 }
  0x9a   :  { %v250_v47 = vmax.f32 %v246_v44, 1.0 }
  0x9c   :  { %3278 = vrcp.f32 %v250_v47  ;;  %v1169_v47 = vld [vmem:[%s2529_s27 + $0x8] sm:$0xff] }
  0x9f   :  { %v708_v45 = vpop.xlane.xlu1 %707  ;;  %v249_v46 = vpop.xlane.xlu0 %248 }
  0xa0   :  { %v251_v49 = vmax.f32 %v249_v46, 1.0  ;;  %v712_v56 = vmax.f32 %v708_v45, 1.0  ;;  %v3129_v45 = vpack.c.bf16 %v968_v42, %v967_v41 }
  0xa2   :  { %3280 = vrcp.f32 %v251_v49 }
  0xa3   :  { %v711_v48 = vpop.xlane.xlu1 %710  ;;  %v145_v50 = vpop.xlane.xlu0 %144 }
  0xa4   :  { %v149_v51 = vmax.f32 %v145_v50, 1.0  ;;  %v713_v55 = vmax.f32 %v711_v48, 1.0 }
  0xa6   :  { %3282 = vrcp.f32 %v149_v51  ;;  %v3279_v58 = vpop.eup %3278 }
  0xa7   :  { %v148_v52 = vpop.xlane.xlu1 %147  ;;  %v607_v54 = vpop.xlane.xlu0 %606 }
  0xa8   :  { %v150_v53 = vmax.f32 %v148_v52, 1.0  ;;  %v611_v57 = vmax.f32 %v607_v54, 1.0  ;;  %v1170_v52 = vld [vmem:[%s2529_s27 + $0x10] sm:$0xff] }
  0xaa   :  { %3284 = vrcp.f32 %v150_v53  ;;  %v1171_v53 = vld [vmem:[%s2529_s27 + $0x18] sm:$0xff] }
  0xab   :  { %3286 = vrcp.f32 %v713_v55  ;;  %v610_v59 = vpop.xlane.xlu1 %609 }
  0xac   :  { %3288 = vrcp.f32 %v712_v56  ;;  %v3281_v60 = vpop.eup %3280  ;;  %v612_v4 = vmax.f32 %v610_v59, 1.0  ;;  %v3145_v56 = vpack.c.bf16 %v1171_v53, %v1170_v52 }
  0xad   :  { %3290 = vrcp.f32 %v611_v57 }
  0xae   :  { %3292 = vrcp.f32 %v612_v4  ;;  %v1275_v4 = vld [vmem:[%s2532_s5 + $0x10] sm:$0xff] }
  0xb0   :  { %v3283_v2 = vpop.eup %3282 }
  0xb4   :  { %v3285_v17 = vpop.eup %3284 }
  0xb5   :  { %v3287_v19 = vpop.eup %3286 }
  0xb6   :  { %v3289_v23 = vpop.eup %3288 }
  0xb7   :  { %v3291_v28 = vpop.eup %3290 }
  0xb8   :  { %v3293_v40 = vpop.eup %3292 }
  0xe2   :  { %v2794_v61 = vpop.f32.mrb[0].mxu1 }
  0xe3   :  { %v324_v3 = vpop.f32.mrb[1].mxu1  ;;  %v336_v9 = vmul.f32 %v3281_v60, %v2794_v61 }
  0xe4   :  { %v334_v5 = vmul.f32 %v3279_v58, %v324_v3  ;;  %v2787_v8 = vpop.f32.mrb[0].mxu0 }
  0xe5   :  { %v223_v10 = vpop.f32.mrb[1].mxu0  ;;  %v235_v24 = vmul.f32 %v3285_v17, %v2787_v8 }
  0xe6   :  { %2803 = vmatprep.mubr.msk.f32.mxu0 %vm341_vm1, %v334_v5  ;;  %v2834_v12 = vpop.f32.mrb[2].mxu1  ;;  %v233_v13 = vmul.f32 %v3283_v2, %v223_v10  ;;  %v1274_v2 = vld [vmem:[%s2532_s5 + $0x8] sm:$0xff]  ;;  %v1276_v5 = vld [vmem:[%s2532_s5 + $0x18] sm:$0xff]  ;;  %s2540_s5 = sld [smem:[%s3949_s0 + %s3356_s2]]  }
  0xe7   :  { %2804 = vmatmul.mubr.msk.f32.vlgmr.msra.gmra.mrb[2].mxu0 %vm341_vm1, %v336_v9  ;;  %v685_v16 = vpop.f32.mrb[3].mxu1  ;;  %v697_v44 = vmul.f32 %v3293_v40, %v2834_v12  ;;  %v3149_v3 = vpack.c.bf16 %v1274_v2, %v1273_v63  ;;  %v3153_v8 = vpack.c.bf16 %v1276_v5, %v1275_v4  ;;  %v1365_v9 = vld [vmem:[%s2533_s9] sm:$0xff]  ;;  %v1366_v10 = vld [vmem:[%s2533_s9 + $0x8] sm:$0xff]  ;;  %v1367_v12 = vld [vmem:[%s2533_s9 + $0x10] sm:$0xff] }
  0xe8   :  { %3088 = vmatpush3.bf16.msra.mxu0 %v3423_v35  ;;  %2814 = vmatprep.mubr.msk.f32.mxu0 %vm341_vm1, %v233_v13  ;;  %v1056_v35 = vld [vmem:[%s3454_s23] sm:$0xff]  ;;  %v695_v37 = vmul.f32 %v3291_v28, %v685_v16  ;;  %v1368_v13 = vld [vmem:[%s2533_s9 + $0x18] sm:$0xff]  ;;  %s2542_s9 = sld [smem:[%s3949_s0 + %s3357_s6]]  }
  0xe9   :  { %3090 = vmatprep.subr.bf16.mxu0 %v3089_v11  ;;  %v3133_v39 = vpack.c.bf16 %v1057_v36, %v1056_v35  ;;  %v3161_v14 = vpack.c.bf16 %v1368_v13, %v1367_v12 }
  0xea   :  { %v2841_v20 = vpop.f32.mrb[4].mxu1 }
  0xeb   :  { %v786_v25 = vpop.f32.mrb[5].mxu1  ;;  %v798_v30 = vmul.f32 %v3287_v19, %v2841_v20 }
  0xec   :  { %v796_v29 = vmul.f32 %v3289_v23, %v786_v25  ;;  %3092 = vmatpush3.bf16.msra.mxu0 %v3089_v11  ;;  %v3157_v11 = vpack.c.bf16 %v1366_v10, %v1365_v9  ;;  %v1260_v25 = vld [vmem:[%s2526_s25] sm:$0xff] }
  0xed   :  { %3094 = vmatprep.subr.bf16.mxu0 %v3093_v18 }
  0xee   :  { %2850 = vmatprep.mubr.msk.f32.mxu1 %vm341_vm1, %v796_v29 }
  0xef   :  { %2815 = vmatmul.mubr.msk.f32.vlgmr.msra.gmra.mrb[2].mxu0 %vm341_vm1, %v235_v24  ;;  %2851 = vmatmul.mubr.msk.f32.vlgmr.msra.gmra.mrb[6].mxu1 %vm341_vm1, %v798_v30  ;;  %v1257_v24 = vld [vmem:[%s2525_s21] sm:$0xff] }
  0xf0   :  { %3096 = vmatpush3.bf16.msra.mxu0 %v3093_v18  ;;  %3120 = vmatpush3.bf16.msra.mxu1 %v3433_v43  ;;  %v1059_v43 = vld [vmem:[%s3454_s23 + $0x18] sm:$0xff] }
  0xf1   :  { %2861 = vmatprep.mubr.msk.f32.mxu1 %vm341_vm1, %v695_v37  ;;  %3098 = vmatprep.subr.bf16.mxu0 %v3097_v31 }
  0xf2   :  { %3122 = vmatprep.subr.bf16.mxu1 %v3121_v33  ;;  %2825 = vmatprep.mubr.msk.f32.mxu0 %vm341_vm1, %v3388_v6  ;;  %v1058_v6 = vld [vmem:[%s3454_s23 + $0x10] sm:$0xff]  ;;  %s2536_s23 = sld [smem:[%s3949_s0 + %s3353_s20]]  }
  0xf3   :  { %v3137_v46 = vpack.c.bf16 %v1059_v43, %v1058_v6  ;;  %v1455_v43 = vlaneseq }
  0xf4   :  { %3100 = vmatpush3.bf16.msra.mxu0 %v3097_v31  ;;  %3124 = vmatpush3.bf16.msra.mxu1 %v3121_v33  ;;  %v1268_v33 = vld [vmem:[%s2528_s3] sm:$0xff] }
  0xf5   :  { %3126 = vmatprep.subr.bf16.mxu1 %v3125_v38  ;;  %3134 = vmatprep.subr.bf16.mxu0 %v3133_v39 }
  0xf7   :  { %2826 = vmatmul.mubr.msk.f32.vlgmr.msra.gmra.mrb[2].mxu0 %vm341_vm1, %v3390_v7  ;;  %2862 = vmatmul.mubr.msk.f32.vlgmr.msra.gmra.mrb[6].mxu1 %vm341_vm1, %v697_v44  ;;  %v1168_v7 = vld [vmem:[%s2529_s27] sm:$0xff]  ;;  %s3901_s27 = sld [smem:[%s3949_s0 + %s3354_s24]]  }
  0xf8   :  { %3128 = vmatpush3.bf16.msra.mxu1 %v3125_v38  ;;  %2872 = vmatprep.mubr.msk.f32.mxu1 %vm341_vm1, %v3382_v0  ;;  %v3141_v48 = vpack.c.bf16 %v1169_v47, %v1168_v7  ;;  %v2555_v0 = vld [vmem:[%s2524_s1] ss:$0 sm:$0xff]  ;;  %v1456_v7 = vshrl.u32 %v1455_v43, 7  ;;  %s2538_s1 = sld [smem:[%s3949_s0 + %s3355_s28]]  }
  0xf9   :  { %3130 = vmatprep.subr.bf16.mxu1 %v3129_v45  ;;  %3136 = vmatpush3.bf16.msra.mxu0 %v3133_v39  ;;  %v2575_v47 = vld [vmem:[%s2534_s7] ss:$0 sm:$0xff] }
  0xfa   :  { %3138 = vmatprep.subr.bf16.mxu0 %v3137_v46 }
  0xfc   :  { %3132 = vmatpush3.bf16.msra.mxu1 %v3129_v45  ;;  %v3349_v45 = vmov 1966171168  }
  0xfd   :  { %3140 = vmatpush3.bf16.msra.mxu0 %v3137_v46  ;;  %3150 = vmatprep.subr.bf16.mxu1 %v3149_v3  ;;  %v1453_v6 = vunpack.c.l.s4 %v3349_v45 }
  0xfe   :  { %3142 = vmatprep.subr.bf16.mxu0 %v3141_v48 }
  0xff   :  { %2873 = vmatmul.mubr.msk.f32.vlgmr.msra.gmra.mrb[6].mxu1 %vm341_vm1, %v3384_v1  ;;  %v1454_v46 = vunpack.c.0.s8 %v1453_v6 }
 0x100   :  { %3152 = vmatpush3.bf16.msra.mxu1 %v3149_v3 }
 0x101   :  { %3154 = vmatprep.subr.bf16.mxu1 %v3153_v8 }
 0x104   :  { %3156 = vmatpush3.bf16.msra.mxu1 %v3153_v8 }
 0x1ca   :  { %v2827_v1 = vpop.f32.mrb[2].mxu0 }
 0x1cb   :  { %v598_v49 = vadd.f32 %v2827_v1, %v2555_v0  ;;  %v580_v50 = vpop.f32.mrb[3].mxu0 }
 0x1cc   :  { %v597_v51 = vadd.f32 %v2555_v0, %v580_v50 }
 0x1cd   :  { %v3493_v55 = vmax.f32 %v598_v49, 0.0 }
 0x1ce   :  { %v3491_v54 = vmax.f32 %v597_v51, 0.0 }
 0x1cf   :  { %v1259_v27 = vmul.f32 %v1257_v24, %v3493_v55 }
 0x1d0   :  { %2883 = vmatprep.mubr.msk.f32.mxu0 %vm341_vm1, %v3491_v54  ;;  %v1258_v30 = vmul.f32 %v1257_v24, %v3491_v54 }
 0x1d1   :  { %2884 = vmatmul.mubr.msk.f32.vlgmr.msra.gmra.mrb[4].mxu0 %vm341_vm1, %v3493_v55 }
 0x1d2   :  { %v2874_v57 = vpop.f32.mrb[6].mxu1  ;;  %3144 = vmatpush3.bf16.msra.mxu0 %v3141_v48  ;;  %v3550_v48 = vsub.s32 %v1454_v46, %v1456_v7 }
 0x1d3   :  { %v1053_v58 = vadd.f32 %v2874_v57, %v2555_v0  ;;  %v1041_v59 = vpop.f32.mrb[7].mxu1  ;;  %3146 = vmatprep.subr.bf16.mxu0 %v3145_v56 }
 0x1d4   :  { %v1052_v60 = vadd.f32 %v2555_v0, %v1041_v59 }
 0x1d5   :  { %v3501_v62 = vmax.f32 %v1053_v58, 0.0 }
 0x1d6   :  { %v3499_v61 = vmax.f32 %v1052_v60, 0.0  ;;  %3148 = vmatpush3.bf16.msra.mxu0 %v3145_v56  ;;  %v3556_v56 = vsub.s32 0, %v1456_v7 }
 0x1d7   :  { %3158 = vmatprep.subr.bf16.mxu0 %v3157_v11  ;;  %v1267_v37 = vmul.f32 %v1265_v32, %v3501_v62 }
 0x1d8   :  { %2886 = vmatprep.mubr.msk.f32.mxu0 %vm341_vm1, %v3499_v61  ;;  %v1266_v40 = vmul.f32 %v1265_v32, %v3499_v61 }
 0x1d9   :  { %2887 = vmatmul.mubr.msk.f32.gmra.mrb[6].mxu0 %vm341_vm1, %v3501_v62 }
 0x1da   :  { %2897 = vmatprep.mubr.msk.f32.mxu0 %vm341_vm1, %v3491_v54 }
 0x1dd   :  { %2898 = vmatmul.mubr.msk.f32.vlgmr.msra.gmra.mrb[8].mxu0 %vm341_vm1, %v3493_v55 }
 0x1de   :  { %2900 = vmatprep.mubr.msk.f32.mxu0 %vm341_vm1, %v3499_v61  ;;  %3160 = vmatpush3.bf16.msra.mxu0 %v3157_v11 }
 0x1df   :  { %3162 = vmatprep.subr.bf16.mxu0 %v3161_v14 }
 0x1e1   :  { %2901 = vmatmul.mubr.msk.f32.gmra.mrb[10].mxu0 %vm341_vm1, %v3501_v62 }
 0x1e2   :  { %3164 = vmatpush3.bf16.msra.mxu0 %v3161_v14 }
 0x2a4   :  { %v2885_v16 = vpop.f32.mrb[4].mxu0 }
 0x2a5   :  { %v1151_v17 = vadd.f32 %v2885_v16, %v2566_v15  ;;  %v1145_v18 = vpop.f32.mrb[5].mxu0 }
 0x2a6   :  { %v1146_v19 = vadd.f32 %v2566_v15, %v1145_v18 }
 0x2a7   :  { %1165 = vst [vmem:[%s2543_s17 + $0x8] sm:$0xff] %v1151_v17 }
 0x2a8   :  { %1164 = vst [vmem:[%s2543_s17] sm:$0xff] %v1146_v19 }
 0x2ac   :  { %v2888_v20 = vpop.f32.mrb[6].mxu0 }
 0x2ad   :  { %v1161_v21 = vadd.f32 %v2888_v20, %v2566_v15  ;;  %v1155_v22 = vpop.f32.mrb[7].mxu0 }
 0x2ae   :  { %v1156_v23 = vadd.f32 %v2566_v15, %v1155_v22 }
 0x2af   :  { %1167 = vst [vmem:[%s2543_s17 + $0x18] sm:$0xff] %v1161_v21 }
 0x2b0   :  { %1166 = vst [vmem:[%s2543_s17 + $0x10] sm:$0xff] %v1156_v23  ;;  %v2899_v26 = vpop.f32.mrb[8].mxu0 }
 0x2b1   :  { %v1262_v28 = vmul.f32 %v2899_v26, %v1260_v25  ;;  %v1238_v29 = vpop.f32.mrb[9].mxu0 }
 0x2b2   :  { %v1261_v31 = vmul.f32 %v1260_v25, %v1238_v29 }
 0x2b3   :  { %v1264_v34 = vadd.f32 %v1262_v28, %v1259_v27 }
 0x2b4   :  { %v1263_v35 = vadd.f32 %v1261_v31, %v1258_v30  ;;  %v2902_v36 = vpop.f32.mrb[10].mxu0 }
 0x2b5   :  { %v1270_v38 = vmul.f32 %v2902_v36, %v1268_v33  ;;  %v1248_v39 = vpop.f32.mrb[11].mxu0 }
 0x2b6   :  { %v1269_v41 = vmul.f32 %v1268_v33, %v1248_v39  ;;  %2911 = vmatprep.mubr.msk.f32.mxu1 %vm341_vm1, %v1263_v35 }
 0x2b7   :  { %v1272_v42 = vadd.f32 %v1270_v38, %v1267_v37  ;;  %2912 = vmatmul.mubr.msk.f32.vlgmr.msra.gmra.mrb[8].mxu1 %vm341_vm1, %v1264_v34 }
 0x2b8   :  { %v1271_v44 = vadd.f32 %v1269_v41, %v1266_v40 }
 0x2ba   :  { %2922 = vmatprep.mubr.msk.f32.mxu0 %vm341_vm1, %v1271_v44 }
 0x2bb   :  { %2923 = vmatmul.mubr.msk.f32.vlgmr.msra.gmra.mrb[12].mxu0 %vm341_vm1, %v1272_v42 }
 0x38a   :  { %v2913_v0 = vpop.f32.mrb[8].mxu1 }
 0x38b   :  { %v1362_v1 = vadd.f32 %v2913_v0, %v2575_v47  ;;  %v1356_v49 = vpop.f32.mrb[9].mxu1 }
 0x38c   :  { %v1357_v50 = vadd.f32 %v2575_v47, %v1356_v49 }
 0x38d   :  { %v1557_v51 = vcombine.high %v1362_v1, %v1362_v1  ;;  %v1564_v52 = vrot.slane %v1362_v1, %v3550_v48 }
 0x38e   :  { %v1451_v53 = vcombine.high %v1357_v50, %v1357_v50  ;;  %v1458_v54 = vrot.slane %v1357_v50, %v3550_v48  ;;  %v3554_v55 = vpop.f32.mrb[12].mxu0 }
 0x38f   :  { %v1572_v57 = vcombine.high %v1564_v52, %v1564_v52  ;;  %v1580_v58 = vrot.slane %v1564_v52, %v3550_v48  ;;  %v1441_v59 = vpop.f32.mrb[13].mxu0  ;;  %v1571_v63 = vrot.slane %v1557_v51, %v3550_v48 }
 0x390   :  { %v1465_v60 = vrot.slane %v1451_v53, %v3550_v48  ;;  %v1466_v61 = vcombine.high %v1458_v54, %v1458_v54  ;;  %v1474_v62 = vrot.slane %v1458_v54, %v3550_v48 }
 0x391   :  { %v1594_v2 = vrot.slane %v1572_v57, %v3550_v48  ;;  %v1602_v9 = vcombine.high %v1580_v58, %v1580_v58  ;;  %v1609_v11 = vrot.slane %v1580_v58, %v3556_v56  ;;  %v1587_v37 = vrot.slane %v1571_v63, %v3550_v48 }
 0x392   :  { %v1467_v3 = vcombine.high %v1465_v60, %v1465_v60  ;;  %v1481_v4 = vrot.slane %v1465_v60, %v3550_v48  ;;  %v1488_v5 = vrot.slane %v1466_v61, %v3550_v48  ;;  %v1496_v8 = vcombine.high %v1474_v62, %v1474_v62 }
 0x393   :  { %v1503_v10 = vrot.slane %v1474_v62, %v3556_v56  ;;  %v1613_v12 = vrot.slane %v1594_v2, %v3556_v56  ;;  %v3575_v20 = vadd.f32 %v3554_v55, %v1609_v11  ;;  %v1617_v32 = vrot.slane %v1602_v9, %v3556_v56 }
 0x394   :  { %v1507_v13 = vrot.slane %v1488_v5, %v3556_v56  ;;  %v1511_v14 = vrot.slane %v1496_v8, %v3556_v56  ;;  %v1498_v15 = vcombine.high %v1488_v5, %v1488_v5  ;;  %v1519_v16 = vrot.slane %v1481_v4, %v3556_v56 }
 0x395   :  { %v3571_v17 = vadd.f32 %v1503_v10, %v1441_v59  ;;  %v1495_v18 = vrot.slane %v1467_v3, %v3550_v48  ;;  %v1497_v19 = vcombine.high %v1481_v4, %v1481_v4  ;;  %v1573_v40 = vcombine.high %v1571_v63, %v1571_v63 }
 0x396   :  { %v3577_v21 = vadd.f32 %v1507_v13, %v1441_v59  ;;  %v3579_v22 = vadd.f32 %v1511_v14, %v1441_v59  ;;  %v1515_v23 = vrot.slane %v1498_v15, %v3556_v56  ;;  %v3582_v24 = vadd.f32 %v1519_v16, %v1441_v59 }
 0x397   :  { %v1548_v25 = vmax.f32 %v3571_v17, 0.0  ;;  %v1523_v26 = vrot.slane %v1495_v18, %v3556_v56  ;;  %v1527_v27 = vrot.slane %v1497_v19, %v3556_v56  ;;  %v1499_v28 = vcombine.high %v1495_v18, %v1495_v18 }
 0x398   :  { %v1549_v29 = vmax.f32 %v3577_v21, 0.0  ;;  %v1550_v30 = vmax.f32 %v3579_v22, 0.0  ;;  %v3589_v31 = vadd.f32 %v1515_v23, %v1441_v59  ;;  %v1552_v42 = vmax.f32 %v3582_v24, 0.0 }
 0x399   :  { %v1662_v33 = vsel %vm341_vm1, %v1548_v25, 0.0  ;;  %v3595_v34 = vadd.f32 %v1523_v26, %v1441_v59  ;;  %v3597_v35 = vadd.f32 %v1527_v27, %v1441_v59  ;;  %v1531_v36 = vrot.slane %v1499_v28, %v3556_v56 }
 0x39a   :  { %1663 = vadd.xlane.f32.xlu0 %v1662_v33  ;;  %v1665_v38 = vsel %vm341_vm1, %v1549_v29, 0.0  ;;  %v1551_v39 = vmax.f32 %v3589_v31, 0.0  ;;  %v3609_v44 = vadd.f32 %v3554_v55, %v1613_v12  ;;  %v3612_v45 = vadd.f32 %v3554_v55, %v1617_v32 }
 0x39b   :  { %1666 = vadd.xlane.f32.xlu1 %v1665_v38  ;;  %v3605_v41 = vadd.f32 %v1531_v36, %v1441_v59  ;;  %v1604_v6 = vcombine.high %v1594_v2, %v1594_v2  ;;  %v1668_v43 = vsel %vm341_vm1, %v1550_v30, 0.0  ;;  %v1553_v7 = vmax.f32 %v3595_v34, 0.0 }
 0x39c   :  { %v1671_v46 = vsel %vm341_vm1, %v1551_v39, 0.0  ;;  %v1625_v0 = vrot.slane %v1587_v37, %v3556_v56  ;;  %v1601_v1 = vrot.slane %v1573_v40, %v3550_v48  ;;  %v1603_v49 = vcombine.high %v1587_v37, %v1587_v37 }
 0x39d   :  { %v1621_v47 = vrot.slane %v1604_v6, %v3556_v56  ;;  %v1674_v50 = vsel %vm341_vm1, %v1552_v42, 0.0  ;;  %v1554_v53 = vmax.f32 %v3597_v35, 0.0  ;;  %v1677_v48 = vsel %vm341_vm1, %v1553_v7, 0.0 }
 0x39e   :  { %1669 = vadd.xlane.f32.xlu0 %v1668_v43  ;;  %v3631_v52 = vadd.f32 %v3554_v55, %v1625_v0  ;;  %v1629_v54 = vrot.slane %v1601_v1, %v3556_v56  ;;  %v1633_v57 = vrot.slane %v1603_v49, %v3556_v56  ;;  %v1605_v58 = vcombine.high %v1601_v1, %v1601_v1 }
 0x39f   :  { %1672 = vadd.xlane.f32.xlu1 %v1671_v46  ;;  %v3628_v51 = vadd.f32 %v3554_v55, %v1621_v47  ;;  %v1555_v59 = vmax.f32 %v3605_v41, 0.0  ;;  %v1680_v63 = vsel %vm341_vm1, %v1554_v53, 0.0  ;;  %v1654_v2 = vmax.f32 %v3575_v20, 0.0 }
 0x3a0   :  { %v3641_v60 = vadd.f32 %v3554_v55, %v1629_v54  ;;  %v3644_v61 = vadd.f32 %v3554_v55, %v1633_v57  ;;  %v1637_v62 = vrot.slane %v1605_v58, %v3556_v56  ;;  %v1655_v5 = vmax.f32 %v3609_v44, 0.0 }
 0x3a1   :  { %v1683_v4 = vsel %vm341_vm1, %v1555_v59, 0.0  ;;  %v1686_v56 = vsel %vm341_vm1, %v1654_v2, 0.0  ;;  %v1656_v8 = vmax.f32 %v3612_v45, 0.0  ;;  %v1657_v9 = vmax.f32 %v3628_v51, 0.0 }
 0x3a2   :  { %1675 = vadd.xlane.f32.xlu0 %v1674_v50  ;;  %v3652_v3 = vadd.f32 %v3554_v55, %v1637_v62  ;;  %v1689_v55 = vsel %vm341_vm1, %v1655_v5, 0.0  ;;  %v1658_v11 = vmax.f32 %v3631_v52, 0.0  ;;  %v1659_v13 = vmax.f32 %v3641_v60, 0.0 }
 0x3a3   :  { %1678 = vadd.xlane.f32.xlu1 %v1677_v48  ;;  %v1692_v10 = vsel %vm341_vm1, %v1656_v8, 0.0  ;;  %v1695_v12 = vsel %vm341_vm1, %v1657_v9, 0.0  ;;  %v1660_v15 = vmax.f32 %v3644_v61, 0.0 }
 0x3a4   :  { %v1698_v14 = vsel %vm341_vm1, %v1658_v11, 0.0  ;;  %v1701_v16 = vsel %vm341_vm1, %v1659_v13, 0.0  ;;  %v1661_v18 = vmax.f32 %v3652_v3, 0.0  ;;  %v1917_v3 = vld [vmem:[%s2537_s11] sm:$0xff] }
 0x3a5   :  { %v1704_v19 = vsel %vm341_vm1, %v1660_v15, 0.0 }
 0x3a6   :  { %1681 = vadd.xlane.f32.xlu0 %v1680_v63  ;;  %v1707_v23 = vsel %vm341_vm1, %v1661_v18, 0.0 }
 0x3a7   :  { %1684 = vadd.xlane.f32.xlu1 %v1683_v4 }
 0x3aa   :  { %1687 = vadd.xlane.f32.xlu0 %v1686_v56 }
 0x3ab   :  { %1690 = vadd.xlane.f32.xlu1 %v1689_v55 }
 0x3ae   :  { %1693 = vadd.xlane.f32.xlu0 %v1692_v10 }
 0x3af   :  { %1696 = vadd.xlane.f32.xlu1 %v1695_v12 }
 0x3b2   :  { %1699 = vadd.xlane.f32.xlu0 %v1698_v14 }
 0x3b3   :  { %1702 = vadd.xlane.f32.xlu1 %v1701_v16 }
 0x3b6   :  { %1705 = vadd.xlane.f32.xlu0 %v1704_v19 }
 0x3b7   :  { %1708 = vadd.xlane.f32.xlu1 %v1707_v23 }
 0x427   :  { %v1664_v26 = vpop.xlane.xlu0 %1663 }
 0x428   :  { %v1711_v27 = vmul.f32 0.03125, %v1664_v26  ;;  %v1667_v28 = vpop.xlane.xlu1 %1666 }
 0x429   :  { %v1712_v32 = vmul.f32 0.03125, %v1667_v28 }
 0x42a   :  { %v3690_v33 = vsub.f32 %v1548_v25, %v1711_v27 }
 0x42b   :  { %v3694_v36 = vsub.f32 %v1549_v29, %v1712_v32  ;;  %v1670_v37 = vpop.xlane.xlu0 %1669 }
 0x42c   :  { %v1713_v38 = vmul.f32 0.03125, %v1670_v37  ;;  %v1673_v40 = vpop.xlane.xlu1 %1672  ;;  %v1743_v6 = vmul.f32 %v3690_v33, %v3690_v33 }
 0x42d   :  { %v1714_v43 = vmul.f32 0.03125, %v1673_v40  ;;  %v1744_v46 = vmul.f32 %v3694_v36, %v3694_v36 }
 0x42e   :  { %v3702_v47 = vsub.f32 %v1550_v30, %v1713_v38  ;;  %v1759_v17 = vsel %vm341_vm1, %v1743_v6, 0.0 }
 0x42f   :  { %v3707_v21 = vsub.f32 %v1551_v39, %v1714_v43  ;;  %1760 = vadd.xlane.f32.xlu0 %v1759_v17  ;;  %v1676_v25 = vpop.xlane.xlu0 %1675  ;;  %v1762_v29 = vsel %vm341_vm1, %v1744_v46, 0.0 }
 0x430   :  { %v1715_v0 = vmul.f32 0.03125, %v1676_v25  ;;  %1763 = vadd.xlane.f32.xlu1 %v1762_v29  ;;  %v1679_v1 = vpop.xlane.xlu1 %1678  ;;  %v1745_v49 = vmul.f32 %v3702_v47, %v3702_v47 }
 0x431   :  { %v1716_v50 = vmul.f32 0.03125, %v1679_v1  ;;  %v1746_v22 = vmul.f32 %v3707_v21, %v3707_v21 }
 0x432   :  { %v3716_v30 = vsub.f32 %v1552_v42, %v1715_v0  ;;  %v1765_v31 = vsel %vm341_vm1, %v1745_v49, 0.0 }
 0x433   :  { %v3721_v39 = vsub.f32 %v1553_v7, %v1716_v50  ;;  %1766 = vadd.xlane.f32.xlu0 %v1765_v31  ;;  %v1682_v54 = vpop.xlane.xlu0 %1681  ;;  %v1768_v57 = vsel %vm341_vm1, %v1746_v22, 0.0  ;;  %v1919_v31 = vld [vmem:[%s2537_s11 + $0x10] sm:$0xff] }
 0x434   :  { %v1717_v58 = vmul.f32 0.03125, %v1682_v54  ;;  %1769 = vadd.xlane.f32.xlu1 %v1768_v57  ;;  %v1685_v48 = vpop.xlane.xlu1 %1684  ;;  %v1747_v62 = vmul.f32 %v3716_v30, %v3716_v30  ;;  %v1920_v57 = vld [vmem:[%s2537_s11 + $0x18] sm:$0xff] }
 0x435   :  { %v1718_v63 = vmul.f32 0.03125, %v1685_v48  ;;  %v1748_v24 = vmul.f32 %v3721_v39, %v3721_v39  ;;  %v2137_v48 = vld [vmem:[%s3806_s15] sm:$0xff] }
 0x436   :  { %v3730_v42 = vsub.f32 %v1554_v53, %v1717_v58  ;;  %v1771_v34 = vsel %vm341_vm1, %v1747_v62, 0.0  ;;  %v3169_v58 = vpack.c.bf16 %v1920_v57, %v1919_v31  ;;  %v2138_v62 = vld [vmem:[%s3806_s15 + $0x8] sm:$0xff] }
 0x437   :  { %v3735_v7 = vsub.f32 %v1555_v59, %v1718_v63  ;;  %1772 = vadd.xlane.f32.xlu0 %v1771_v34  ;;  %v1688_v4 = vpop.xlane.xlu0 %1687  ;;  %v1774_v56 = vsel %vm341_vm1, %v1748_v24, 0.0  ;;  %v2139_v63 = vld [vmem:[%s3806_s15 + $0x10] sm:$0xff]  ;;  %v3173_v24 = vpack.c.bf16 %v2138_v62, %v2137_v48  ;;  %v2140_v34 = vld [vmem:[%s3806_s15 + $0x18] sm:$0xff] }
 0x438   :  { %v1719_v55 = vmul.f32 0.03125, %v1688_v4  ;;  %1775 = vadd.xlane.f32.xlu1 %v1774_v56  ;;  %v1691_v10 = vpop.xlane.xlu1 %1690  ;;  %v1749_v12 = vmul.f32 %v3730_v42, %v3730_v42  ;;  %v3177_v4 = vpack.c.bf16 %v2140_v34, %v2139_v63  ;;  %v2141_v56 = vld [vmem:[%s3806_s15 + $0x20] sm:$0xff] }
 0x439   :  { %v1720_v14 = vmul.f32 0.03125, %v1691_v10  ;;  %v1750_v35 = vmul.f32 %v3735_v7, %v3735_v7  ;;  %3174 = vmatprep.subr.bf16.mxu0 %v3173_v24 }
 0x43a   :  { %v3744_v53 = vsub.f32 %v1654_v2, %v1719_v55  ;;  %v1777_v41 = vsel %vm341_vm1, %v1749_v12, 0.0  ;;  %v2142_v55 = vld [vmem:[%s3806_s15 + $0x28] sm:$0xff]  ;;  %3176 = vmatpush3.bf16.msra.mxu0 %v3173_v24  ;;  %v2143_v12 = vld [vmem:[%s3806_s15 + $0x30] sm:$0xff] }
 0x43b   :  { %v3749_v59 = vsub.f32 %v1655_v5, %v1720_v14  ;;  %1778 = vadd.xlane.f32.xlu0 %v1777_v41  ;;  %v1694_v16 = vpop.xlane.xlu0 %1693  ;;  %v1780_v19 = vsel %vm341_vm1, %v1750_v35, 0.0  ;;  %3178 = vmatprep.subr.bf16.mxu0 %v3177_v4  ;;  %v3181_v10 = vpack.c.bf16 %v2142_v55, %v2141_v56  ;;  %v2144_v14 = vld [vmem:[%s3806_s15 + $0x38] sm:$0xff]  ;;  %v2145_v41 = vld [vmem:[%s3806_s15 + $0x40] sm:$0xff] }
 0x43c   :  { %v1721_v23 = vmul.f32 0.03125, %v1694_v16  ;;  %1781 = vadd.xlane.f32.xlu1 %v1780_v19  ;;  %v1697_v26 = vpop.xlane.xlu1 %1696  ;;  %v1751_v27 = vmul.f32 %v3744_v53, %v3744_v53  ;;  %v3185_v35 = vpack.c.bf16 %v2144_v14, %v2143_v12  ;;  %v2146_v16 = vld [vmem:[%s3806_s15 + $0x48] sm:$0xff] }
 0x43d   :  { %v1722_v28 = vmul.f32 0.03125, %v1697_v26  ;;  %v1752_v20 = vmul.f32 %v3749_v59, %v3749_v59  ;;  %v3189_v19 = vpack.c.bf16 %v2146_v16, %v2145_v41  ;;  %v2148_v26 = vld [vmem:[%s3806_s15 + $0x58] sm:$0xff] }
 0x43e   :  { %v3758_v2 = vsub.f32 %v1656_v8, %v1721_v23  ;;  %v1783_v44 = vsel %vm341_vm1, %v1751_v27, 0.0  ;;  %3180 = vmatpush3.bf16.msra.mxu0 %v3177_v4  ;;  %v2147_v23 = vld [vmem:[%s3806_s15 + $0x50] sm:$0xff]  ;;  %v3832_v4 = vld [vmem:[%s2536_s23] ss:$0 sm:$0xff] }
 0x43f   :  { %v3763_v5 = vsub.f32 %v1657_v9, %v1722_v28  ;;  %1784 = vadd.xlane.f32.xlu0 %v1783_v44  ;;  %v1700_v32 = vpop.xlane.xlu0 %1699  ;;  %v1786_v37 = vsel %vm341_vm1, %v1752_v20, 0.0  ;;  %3182 = vmatprep.subr.bf16.mxu0 %v3181_v10  ;;  %v3193_v27 = vpack.c.bf16 %v2148_v26, %v2147_v23  ;;  %v2149_v28 = vld [vmem:[%s3806_s15 + $0x60] sm:$0xff]  ;;  %v2150_v20 = vld [vmem:[%s3806_s15 + $0x68] sm:$0xff] }
 0x440   :  { %v1723_v38 = vmul.f32 0.03125, %v1700_v32  ;;  %1787 = vadd.xlane.f32.xlu1 %v1786_v37  ;;  %v1703_v40 = vpop.xlane.xlu1 %1702  ;;  %v1753_v6 = vmul.f32 %v3758_v2, %v3758_v2  ;;  %v3197_v44 = vpack.c.bf16 %v2150_v20, %v2149_v28 }
 0x441   :  { %v1724_v43 = vmul.f32 0.03125, %v1703_v40  ;;  %v1754_v45 = vmul.f32 %v3763_v5, %v3763_v5 }
 0x442   :  { %v3772_v8 = vsub.f32 %v1658_v11, %v1723_v38  ;;  %v1789_v51 = vsel %vm341_vm1, %v1753_v6, 0.0  ;;  %3184 = vmatpush3.bf16.msra.mxu0 %v3181_v10 }
 0x443   :  { %v3777_v9 = vsub.f32 %v1659_v13, %v1724_v43  ;;  %1790 = vadd.xlane.f32.xlu0 %v1789_v51  ;;  %v1706_v46 = vpop.xlane.xlu0 %1705  ;;  %v1792_v17 = vsel %vm341_vm1, %v1754_v45, 0.0  ;;  %3186 = vmatprep.subr.bf16.mxu0 %v3185_v35 }
 0x444   :  { %v1725_v25 = vmul.f32 0.03125, %v1706_v46  ;;  %1793 = vadd.xlane.f32.xlu1 %v1792_v17  ;;  %v1709_v29 = vpop.xlane.xlu1 %1708  ;;  %v1755_v0 = vmul.f32 %v3772_v8, %v3772_v8 }
 0x445   :  { %v1726_v1 = vmul.f32 0.03125, %v1709_v29  ;;  %v1756_v52 = vmul.f32 %v3777_v9, %v3777_v9 }
 0x446   :  { %v3786_v11 = vsub.f32 %v1660_v15, %v1725_v25  ;;  %v1795_v60 = vsel %vm341_vm1, %v1755_v0, 0.0  ;;  %3188 = vmatpush3.bf16.msra.mxu0 %v3185_v35 }
 0x447   :  { %v3791_v13 = vsub.f32 %v1661_v18, %v1726_v1  ;;  %1796 = vadd.xlane.f32.xlu0 %v1795_v60  ;;  %v1798_v49 = vsel %vm341_vm1, %v1756_v52, 0.0  ;;  %v1918_v18 = vld [vmem:[%s2537_s11 + $0x8] sm:$0xff]  ;;  %3190 = vmatprep.subr.bf16.mxu0 %v3189_v19 }
 0x448   :  { %1799 = vadd.xlane.f32.xlu1 %v1798_v49  ;;  %v1757_v50 = vmul.f32 %v3786_v11, %v3786_v11  ;;  %v3165_v54 = vpack.c.bf16 %v1918_v18, %v1917_v3 }
 0x449   :  { %v1758_v22 = vmul.f32 %v3791_v13, %v3791_v13 }
 0x44a   :  { %v1801_v61 = vsel %vm341_vm1, %v1757_v50, 0.0  ;;  %3166 = vmatprep.subr.bf16.mxu1 %v3165_v54  ;;  %3192 = vmatpush3.bf16.msra.mxu0 %v3189_v19 }
 0x44b   :  { %1802 = vadd.xlane.f32.xlu0 %v1801_v61  ;;  %v1804_v15 = vsel %vm341_vm1, %v1758_v22, 0.0  ;;  %3168 = vmatpush3.bf16.msra.mxu1 %v3165_v54  ;;  %v3828_v54 = vld [vmem:[%s2535_s19] ss:$0 sm:$0xff] }
 0x44c   :  { %1805 = vadd.xlane.f32.xlu1 %v1804_v15  ;;  %3170 = vmatprep.subr.bf16.mxu1 %v3169_v58 }
 0x44d   :  { %3194 = vmatprep.subr.bf16.mxu0 %v3193_v27 }
 0x44e   :  { %3196 = vmatpush3.bf16.msra.mxu0 %v3193_v27 }
 0x44f   :  { %3172 = vmatpush3.bf16.msra.mxu1 %v3169_v58  ;;  %3198 = vmatprep.subr.bf16.mxu0 %v3197_v44 }
 0x452   :  { %3200 = vmatpush3.bf16.msra.mxu0 %v3197_v44 }
 0x4bc   :  { %v1761_v32 = vpop.xlane.xlu0 %1760 }
 0x4bd   :  { %v1807_v37 = vmul.f32 0.03125, %v1761_v32  ;;  %v1764_v38 = vpop.xlane.xlu1 %1763 }
 0x4be   :  { %v1808_v40 = vmul.f32 0.03125, %v1764_v38 }
 0x4bf   :  { %v1823_v6 = vadd.f32 1e-05, %v1807_v37 }
 0x4c0   :  { %v1824_v43 = vadd.f32 1e-05, %v1808_v40  ;;  %v1767_v45 = vpop.xlane.xlu0 %1766 }
 0x4c1   :  { %3294 = vrsqrt.f32 %v1823_v6  ;;  %v1809_v51 = vmul.f32 0.03125, %v1767_v45  ;;  %v1770_v46 = vpop.xlane.xlu1 %1769 }
 0x4c2   :  { %3296 = vrsqrt.f32 %v1824_v43  ;;  %v1810_v17 = vmul.f32 0.03125, %v1770_v46 }
 0x4c3   :  { %v1825_v25 = vadd.f32 1e-05, %v1809_v51 }
 0x4c4   :  { %v1826_v29 = vadd.f32 1e-05, %v1810_v17  ;;  %v1773_v0 = vpop.xlane.xlu0 %1772 }
 0x4c5   :  { %3298 = vrsqrt.f32 %v1825_v25  ;;  %v1811_v1 = vmul.f32 0.03125, %v1773_v0  ;;  %v1776_v52 = vpop.xlane.xlu1 %1775 }
 0x4c6   :  { %3300 = vrsqrt.f32 %v1826_v29  ;;  %v1812_v60 = vmul.f32 0.03125, %v1776_v52 }
 0x4c7   :  { %v1827_v49 = vadd.f32 1e-05, %v1811_v1 }
 0x4c8   :  { %v1828_v50 = vadd.f32 1e-05, %v1812_v60  ;;  %v1779_v22 = vpop.xlane.xlu0 %1778 }
 0x4c9   :  { %3302 = vrsqrt.f32 %v1827_v49  ;;  %v1813_v61 = vmul.f32 0.03125, %v1779_v22  ;;  %v1782_v15 = vpop.xlane.xlu1 %1781 }
 0x4ca   :  { %3304 = vrsqrt.f32 %v1828_v50  ;;  %v1814_v3 = vmul.f32 0.03125, %v1782_v15 }
 0x4cb   :  { %v3295_v18 = vpop.eup %3294  ;;  %v1829_v31 = vadd.f32 1e-05, %v1813_v61 }
 0x4cc   :  { %v3297_v57 = vpop.eup %3296  ;;  %v1830_v58 = vadd.f32 1e-05, %v1814_v3  ;;  %v1785_v48 = vpop.xlane.xlu0 %1784  ;;  %v1855_v62 = vmul.f32 %v3295_v18, %v3690_v33 }
 0x4cd   :  { %v1856_v63 = vmul.f32 %v3297_v57, %v3694_v36  ;;  %3306 = vrsqrt.f32 %v1829_v31  ;;  %v1815_v24 = vmul.f32 0.03125, %v1785_v48  ;;  %v1788_v34 = vpop.xlane.xlu1 %1787 }
 0x4ce   :  { %3308 = vrsqrt.f32 %v1830_v58  ;;  %v1816_v56 = vmul.f32 0.03125, %v1788_v34  ;;  %v1878_v55 = vmul.f32 %v3828_v54, %v1855_v62 }
 0x4cf   :  { %v3299_v10 = vpop.eup %3298  ;;  %v1831_v12 = vadd.f32 1e-05, %v1815_v24  ;;  %v1879_v14 = vmul.f32 %v3828_v54, %v1856_v63 }
 0x4d0   :  { %v3301_v35 = vpop.eup %3300  ;;  %v1832_v41 = vadd.f32 1e-05, %v1816_v56  ;;  %v1791_v16 = vpop.xlane.xlu0 %1790  ;;  %v1901_v33 = vadd.f32 %v3832_v4, %v1878_v55  ;;  %v1857_v36 = vmul.f32 %v3299_v10, %v3702_v47 }
 0x4d1   :  { %3310 = vrsqrt.f32 %v1831_v12  ;;  %v1817_v19 = vmul.f32 0.03125, %v1791_v16  ;;  %v1794_v23 = vpop.xlane.xlu1 %1793  ;;  %v1902_v26 = vadd.f32 %v3832_v4, %v1879_v14  ;;  %v1858_v27 = vmul.f32 %v3301_v35, %v3707_v21 }
 0x4d2   :  { %3312 = vrsqrt.f32 %v1832_v41  ;;  %v1818_v28 = vmul.f32 0.03125, %v1794_v23  ;;  %2933 = vmatprep.mubr.msk.f32.mxu1 %vm341_vm1, %v1901_v33  ;;  %v1880_v20 = vmul.f32 %v3828_v54, %v1857_v36 }
 0x4d3   :  { %v3303_v44 = vpop.eup %3302  ;;  %v1833_v32 = vadd.f32 1e-05, %v1817_v19  ;;  %2934 = vmatmul.mubr.msk.f32.vlgmr.msra.gmra.mrb[10].mxu1 %vm341_vm1, %v1902_v26  ;;  %v1881_v37 = vmul.f32 %v3828_v54, %v1858_v27 }
 0x4d4   :  { %v3305_v47 = vpop.eup %3304  ;;  %v1834_v38 = vadd.f32 1e-05, %v1818_v28  ;;  %v1797_v40 = vpop.xlane.xlu0 %1796  ;;  %v1903_v6 = vadd.f32 %v3832_v4, %v1880_v20  ;;  %v1859_v43 = vmul.f32 %v3303_v44, %v3716_v30 }
 0x4d5   :  { %3314 = vrsqrt.f32 %v1833_v32  ;;  %v1819_v21 = vmul.f32 0.03125, %v1797_v40  ;;  %v1800_v45 = vpop.xlane.xlu1 %1799  ;;  %v1904_v51 = vadd.f32 %v3832_v4, %v1881_v37  ;;  %v1860_v46 = vmul.f32 %v3305_v47, %v3721_v39  ;;  %v2152_v40 = vld [vmem:[%s3806_s15 + $0x78] sm:$0xff] }
 0x4d6   :  { %3316 = vrsqrt.f32 %v1834_v38  ;;  %v1820_v17 = vmul.f32 0.03125, %v1800_v45  ;;  %2936 = vmatprep.mubr.msk.f32.mxu1 %vm341_vm1, %v1903_v6  ;;  %v1882_v25 = vmul.f32 %v3828_v54, %v1859_v43 }
 0x4d7   :  { %v3307_v29 = vpop.eup %3306  ;;  %v1835_v0 = vadd.f32 1e-05, %v1819_v21  ;;  %2937 = vmatmul.mubr.msk.f32.gmra.mrb[12].mxu1 %vm341_vm1, %v1904_v51  ;;  %v1883_v1 = vmul.f32 %v3828_v54, %v1860_v46  ;;  %v2324_v21 = vld [vmem:[%s3901_s27 + $0x18] sm:$0xff]  ;;  %v2325_v51 = vld [vmem:[%s3901_s27 + $0x20] sm:$0xff]  ;;  %v2326_v46 = vld [vmem:[%s3901_s27 + $0x28] sm:$0xff] }
 0x4d8   :  { %v3309_v30 = vpop.eup %3308  ;;  %v1836_v52 = vadd.f32 1e-05, %v1820_v17  ;;  %v1803_v60 = vpop.xlane.xlu0 %1802  ;;  %v1905_v49 = vadd.f32 %v3832_v4, %v1882_v25  ;;  %v1861_v50 = vmul.f32 %v3307_v29, %v3730_v42  ;;  %v3213_v17 = vpack.c.bf16 %v2326_v46, %v2325_v51  ;;  %v2327_v25 = vld [vmem:[%s3901_s27 + $0x30] sm:$0xff]  ;;  %v2328_v29 = vld [vmem:[%s3901_s27 + $0x38] sm:$0xff] }
 0x4d9   :  { %3318 = vrsqrt.f32 %v1835_v0  ;;  %v1821_v39 = vmul.f32 0.03125, %v1803_v60  ;;  %v1806_v22 = vpop.xlane.xlu1 %1805  ;;  %v1906_v61 = vadd.f32 %v3832_v4, %v1883_v1  ;;  %v1862_v15 = vmul.f32 %v3309_v30, %v3735_v7  ;;  %v2329_v1 = vld [vmem:[%s3901_s27 + $0x40] sm:$0xff]  ;;  %v2330_v30 = vld [vmem:[%s3901_s27 + $0x48] sm:$0xff]  ;;  %v2331_v60 = vld [vmem:[%s3901_s27 + $0x50] sm:$0xff] }
 0x4da   :  { %3320 = vrsqrt.f32 %v1836_v52  ;;  %v1822_v3 = vmul.f32 0.03125, %v1806_v22  ;;  %2939 = vmatprep.mubr.msk.f32.mxu1 %vm341_vm1, %v1905_v49  ;;  %v1884_v18 = vmul.f32 %v3828_v54, %v1861_v50  ;;  %v3217_v0 = vpack.c.bf16 %v2328_v29, %v2327_v25  ;;  %v2332_v49 = vld [vmem:[%s3901_s27 + $0x58] sm:$0xff]  ;;  %v2334_v22 = vld [vmem:[%s3901_s27 + $0x68] sm:$0xff]  ;;  %v2335_v51 = vld [vmem:[%s3901_s27 + $0x70] sm:$0xff] }
 0x4db   :  { %v3311_v31 = vpop.eup %3310  ;;  %v1837_v57 = vadd.f32 1e-05, %v1821_v39  ;;  %2940 = vmatmul.mubr.msk.f32.gmra.mrb[14].mxu1 %vm341_vm1, %v1906_v61  ;;  %v1885_v58 = vmul.f32 %v3828_v54, %v1862_v15  ;;  %v3221_v52 = vpack.c.bf16 %v2330_v30, %v2329_v1  ;;  %v3225_v50 = vpack.c.bf16 %v2332_v49, %v2331_v60  ;;  %v2333_v39 = vld [vmem:[%s3901_s27 + $0x60] sm:$0xff]  ;;  %v2336_v46 = vld [vmem:[%s3901_s27 + $0x78] sm:$0xff] }
 0x4dc   :  { %v3313_v42 = vpop.eup %3312  ;;  %v1838_v48 = vadd.f32 1e-05, %v1822_v3  ;;  %v1907_v62 = vadd.f32 %v3832_v4, %v1884_v18  ;;  %v1863_v63 = vmul.f32 %v3311_v31, %v3744_v53  ;;  %v3229_v61 = vpack.c.bf16 %v2334_v22, %v2333_v39  ;;  %v2582_v15 = vld [vmem:[%s2538_s1] ss:$0 sm:$0xff] }
 0x4dd   :  { %3322 = vrsqrt.f32 %v1837_v57  ;;  %v1908_v7 = vadd.f32 %v3832_v4, %v1885_v58  ;;  %v1864_v24 = vmul.f32 %v3313_v42, %v3749_v59  ;;  %v2599_v25 = vld [vmem:[%s2540_s5] ss:$0 sm:$0xff] }
 0x4de   :  { %3324 = vrsqrt.f32 %v1838_v48  ;;  %2942 = vmatprep.mubr.msk.f32.mxu1 %vm341_vm1, %v1907_v62  ;;  %v1886_v34 = vmul.f32 %v3828_v54, %v1863_v63 }
 0x4df   :  { %v3315_v56 = vpop.eup %3314  ;;  %2943 = vmatmul.mubr.msk.f32.gmra.mrb[16].mxu1 %vm341_vm1, %v1908_v7  ;;  %v1887_v55 = vmul.f32 %v3828_v54, %v1864_v24 }
 0x4e0   :  { %v3317_v10 = vpop.eup %3316  ;;  %v1909_v12 = vadd.f32 %v3832_v4, %v1886_v34  ;;  %v1865_v53 = vmul.f32 %v3315_v56, %v3758_v2 }
 0x4e1   :  { %v1910_v14 = vadd.f32 %v3832_v4, %v1887_v55  ;;  %v1866_v35 = vmul.f32 %v3317_v10, %v3763_v5 }
 0x4e2   :  { %2945 = vmatprep.mubr.msk.f32.mxu1 %vm341_vm1, %v1909_v12  ;;  %v1888_v59 = vmul.f32 %v3828_v54, %v1865_v53 }
 0x4e3   :  { %v3319_v41 = vpop.eup %3318  ;;  %2946 = vmatmul.mubr.msk.f32.gmra.mrb[18].mxu1 %vm341_vm1, %v1910_v14  ;;  %v1889_v16 = vmul.f32 %v3828_v54, %v1866_v35 }
 0x4e4   :  { %v3321_v33 = vpop.eup %3320  ;;  %v1911_v36 = vadd.f32 %v3832_v4, %v1888_v59  ;;  %v1867_v19 = vmul.f32 %v3319_v41, %v3772_v8 }
 0x4e5   :  { %v1912_v2 = vadd.f32 %v3832_v4, %v1889_v16  ;;  %v1868_v23 = vmul.f32 %v3321_v33, %v3777_v9 }
 0x4e6   :  { %2948 = vmatprep.mubr.msk.f32.mxu1 %vm341_vm1, %v1911_v36  ;;  %v1890_v5 = vmul.f32 %v3828_v54, %v1867_v19 }
 0x4e7   :  { %v3323_v26 = vpop.eup %3322  ;;  %2949 = vmatmul.mubr.msk.f32.gmra.mrb[20].mxu1 %vm341_vm1, %v1912_v2  ;;  %v1891_v27 = vmul.f32 %v3828_v54, %v1868_v23 }
 0x4e8   :  { %v3325_v28 = vpop.eup %3324  ;;  %v1913_v20 = vadd.f32 %v3832_v4, %v1890_v5  ;;  %v1869_v8 = vmul.f32 %v3323_v26, %v3786_v11  ;;  %v2151_v11 = vld [vmem:[%s3806_s15 + $0x70] sm:$0xff] }
 0x4e9   :  { %v1914_v44 = vadd.f32 %v3832_v4, %v1891_v27  ;;  %v1870_v9 = vmul.f32 %v3325_v28, %v3791_v13  ;;  %v3201_v6 = vpack.c.bf16 %v2152_v40, %v2151_v11  ;;  %v2321_v13 = vld [vmem:[%s3901_s27] sm:$0xff] }
 0x4ea   :  { %2951 = vmatprep.mubr.msk.f32.mxu1 %vm341_vm1, %v1913_v20  ;;  %v1892_v32 = vmul.f32 %v3828_v54, %v1869_v8 }
 0x4eb   :  { %2952 = vmatmul.mubr.msk.f32.gmra.mrb[22].mxu1 %vm341_vm1, %v1914_v44  ;;  %v1893_v37 = vmul.f32 %v3828_v54, %v1870_v9  ;;  %3202 = vmatprep.subr.bf16.mxu0 %v3201_v6  ;;  %v2322_v54 = vld [vmem:[%s3901_s27 + $0x8] sm:$0xff] }
 0x4ec   :  { %v1915_v47 = vadd.f32 %v3832_v4, %v1892_v32  ;;  %3204 = vmatpush3.bf16.msra.mxu0 %v3201_v6  ;;  %v3205_v43 = vpack.c.bf16 %v2322_v54, %v2321_v13 }
 0x4ed   :  { %v1916_v38 = vadd.f32 %v3832_v4, %v1893_v37  ;;  %v2323_v4 = vld [vmem:[%s3901_s27 + $0x10] sm:$0xff] }
 0x4ee   :  { %2954 = vmatprep.mubr.msk.f32.mxu1 %vm341_vm1, %v1915_v47  ;;  %v3209_v45 = vpack.c.bf16 %v2324_v21, %v2323_v4  ;;  %3206 = vmatprep.subr.bf16.mxu1 %v3205_v43 }
 0x4ef   :  { %2955 = vmatmul.mubr.msk.f32.gmra.mrb[24].mxu1 %vm341_vm1, %v1916_v38 }
 0x4f0   :  { %3208 = vmatpush3.bf16.msra.mxu1 %v3205_v43 }
 0x4f1   :  { %3210 = vmatprep.subr.bf16.mxu1 %v3209_v45 }
 0x4f4   :  { %3212 = vmatpush3.bf16.msra.mxu1 %v3209_v45 }
 0x4f5   :  { %3214 = vmatprep.subr.bf16.mxu1 %v3213_v17 }
 0x4f8   :  { %3216 = vmatpush3.bf16.msra.mxu1 %v3213_v17  ;;  %v3233_v17 = vpack.c.bf16 %v2336_v46, %v2335_v51 }
 0x4f9   :  { %3218 = vmatprep.subr.bf16.mxu1 %v3217_v0 }
 0x4fc   :  { %3220 = vmatpush3.bf16.msra.mxu1 %v3217_v0 }
 0x4fd   :  { %3222 = vmatprep.subr.bf16.mxu1 %v3221_v52 }
 0x500   :  { %3224 = vmatpush3.bf16.msra.mxu1 %v3221_v52 }
 0x501   :  { %3226 = vmatprep.subr.bf16.mxu1 %v3225_v50 }
 0x504   :  { %3228 = vmatpush3.bf16.msra.mxu1 %v3225_v50 }
 0x505   :  { %3230 = vmatprep.subr.bf16.mxu1 %v3229_v61 }
 0x508   :  { %3232 = vmatpush3.bf16.msra.mxu1 %v3229_v61 }
 0x509   :  { %3234 = vmatprep.subr.bf16.mxu1 %v3233_v17 }
 0x50c   :  { %3236 = vmatpush3.bf16.msra.mxu1 %v3233_v17 }
 0x5a6   :  { %v2935_v3 = vpop.f32.mrb[10].mxu1 }
 0x5a7   :  { %v2048_v18 = vadd.f32 %v2935_v3, %v2582_v15  ;;  %v2042_v31 = vpop.f32.mrb[11].mxu1 }
 0x5a8   :  { %v2043_v57 = vadd.f32 %v2582_v15, %v2042_v31 }
 0x5a9   :  { %v2122_v48 = vmax.f32 %v2048_v18, 0.0 }
 0x5aa   :  { %v2121_v58 = vmax.f32 %v2043_v57, 0.0  ;;  %v2938_v42 = vpop.f32.mrb[12].mxu1 }
 0x5ab   :  { %v2058_v62 = vadd.f32 %v2938_v42, %v2582_v15  ;;  %v2052_v63 = vpop.f32.mrb[13].mxu1 }
 0x5ac   :  { %v2053_v7 = vadd.f32 %v2582_v15, %v2052_v63  ;;  %2989 = vmatprep.mubr.f32.mxu0 %v2121_v58 }
 0x5ad   :  { %2990 = vmatmul.mubr.f32.vlgmr.msra.gmra.mrb[14].mxu0 %v2122_v48  ;;  %v2124_v56 = vmax.f32 %v2058_v62, 0.0 }
 0x5ae   :  { %v2123_v24 = vmax.f32 %v2053_v7, 0.0  ;;  %v2941_v34 = vpop.f32.mrb[14].mxu1 }
 0x5af   :  { %v2068_v55 = vadd.f32 %v2941_v34, %v2582_v15  ;;  %v2062_v10 = vpop.f32.mrb[15].mxu1 }
 0x5b0   :  { %v2063_v12 = vadd.f32 %v2582_v15, %v2062_v10  ;;  %2992 = vmatprep.mubr.f32.mxu0 %v2123_v24 }
 0x5b1   :  { %2993 = vmatmul.mubr.f32.gmra.mrb[16].mxu0 %v2124_v56  ;;  %v2126_v35 = vmax.f32 %v2068_v55, 0.0 }
 0x5b2   :  { %v2125_v53 = vmax.f32 %v2063_v12, 0.0  ;;  %v2944_v14 = vpop.f32.mrb[16].mxu1 }
 0x5b3   :  { %v2078_v59 = vadd.f32 %v2944_v14, %v2582_v15  ;;  %v2072_v41 = vpop.f32.mrb[17].mxu1 }
 0x5b4   :  { %v2073_v16 = vadd.f32 %v2582_v15, %v2072_v41  ;;  %2995 = vmatprep.mubr.f32.mxu0 %v2125_v53 }
 0x5b5   :  { %2996 = vmatmul.mubr.f32.gmra.mrb[18].mxu0 %v2126_v35  ;;  %v2128_v19 = vmax.f32 %v2078_v59, 0.0 }
 0x5b6   :  { %v2127_v33 = vmax.f32 %v2073_v16, 0.0  ;;  %v2947_v36 = vpop.f32.mrb[18].mxu1 }
 0x5b7   :  { %v2088_v2 = vadd.f32 %v2947_v36, %v2582_v15  ;;  %v2082_v23 = vpop.f32.mrb[19].mxu1 }
 0x5b8   :  { %v2083_v5 = vadd.f32 %v2582_v15, %v2082_v23  ;;  %2998 = vmatprep.mubr.f32.mxu0 %v2127_v33 }
 0x5b9   :  { %2999 = vmatmul.mubr.f32.gmra.mrb[20].mxu0 %v2128_v19  ;;  %v2130_v28 = vmax.f32 %v2088_v2, 0.0 }
 0x5ba   :  { %v2129_v26 = vmax.f32 %v2083_v5, 0.0  ;;  %v2950_v27 = vpop.f32.mrb[20].mxu1 }
 0x5bb   :  { %v2098_v20 = vadd.f32 %v2950_v27, %v2582_v15  ;;  %v2092_v8 = vpop.f32.mrb[21].mxu1 }
 0x5bc   :  { %v2093_v44 = vadd.f32 %v2582_v15, %v2092_v8  ;;  %3001 = vmatprep.mubr.f32.mxu0 %v2129_v26 }
 0x5bd   :  { %3002 = vmatmul.mubr.f32.gmra.mrb[22].mxu0 %v2130_v28  ;;  %v2132_v37 = vmax.f32 %v2098_v20, 0.0 }
 0x5be   :  { %v2131_v9 = vmax.f32 %v2093_v44, 0.0  ;;  %v2953_v32 = vpop.f32.mrb[22].mxu1 }
 0x5bf   :  { %v2108_v47 = vadd.f32 %v2953_v32, %v2582_v15  ;;  %v2102_v38 = vpop.f32.mrb[23].mxu1 }
 0x5c0   :  { %v2103_v11 = vadd.f32 %v2582_v15, %v2102_v38  ;;  %3004 = vmatprep.mubr.f32.mxu0 %v2131_v9 }
 0x5c1   :  { %3005 = vmatmul.mubr.f32.gmra.mrb[24].mxu0 %v2132_v37  ;;  %v2134_v13 = vmax.f32 %v2108_v47, 0.0  ;;  %v2600_v37 = vld [vmem:[%s2542_s9] ss:$0 sm:$0xff] }
 0x5c2   :  { %v2133_v40 = vmax.f32 %v2103_v11, 0.0  ;;  %v2956_v6 = vpop.f32.mrb[24].mxu1 }
 0x5c3   :  { %v2118_v54 = vadd.f32 %v2956_v6, %v2582_v15  ;;  %v2112_v4 = vpop.f32.mrb[25].mxu1 }
 0x5c4   :  { %v2113_v43 = vadd.f32 %v2582_v15, %v2112_v4  ;;  %3007 = vmatprep.mubr.f32.mxu0 %v2133_v40 }
 0x5c5   :  { %3008 = vmatmul.mubr.f32.gmra.mrb[26].mxu0 %v2134_v13  ;;  %v2136_v45 = vmax.f32 %v2118_v54, 0.0 }
 0x5c6   :  { %v2135_v21 = vmax.f32 %v2113_v43, 0.0 }
 0x5c8   :  { %3010 = vmatprep.mubr.f32.mxu0 %v2135_v21 }
 0x5c9   :  { %3011 = vmatmul.mubr.f32.gmra.mrb[28].mxu0 %v2136_v45 }
 0x680   :  { %v2991_v29 = vpop.f32.mrb[14].mxu0 }
 0x681   :  { %v2232_v0 = vadd.f32 %v2991_v29, %v2599_v25  ;;  %v2226_v1 = vpop.f32.mrb[15].mxu0 }
 0x682   :  { %v2227_v30 = vadd.f32 %v2599_v25, %v2226_v1 }
 0x683   :  { %v2306_v49 = vmax.f32 %v2232_v0, 0.0 }
 0x684   :  { %v2305_v52 = vmax.f32 %v2227_v30, 0.0  ;;  %v2994_v60 = vpop.f32.mrb[16].mxu0 }
 0x685   :  { %v2242_v50 = vadd.f32 %v2994_v60, %v2599_v25  ;;  %v2236_v39 = vpop.f32.mrb[17].mxu0 }
 0x686   :  { %v2237_v22 = vadd.f32 %v2599_v25, %v2236_v39  ;;  %3045 = vmatprep.mubr.f32.mxu1 %v2305_v52 }
 0x687   :  { %3046 = vmatmul.mubr.f32.vlgmr.msra.gmra.mrb[26].mxu1 %v2306_v49  ;;  %v2308_v3 = vmax.f32 %v2242_v50, 0.0 }
 0x688   :  { %v2307_v61 = vmax.f32 %v2237_v22, 0.0  ;;  %v2997_v15 = vpop.f32.mrb[18].mxu0 }
 0x689   :  { %v2252_v18 = vadd.f32 %v2997_v15, %v2599_v25  ;;  %v2246_v31 = vpop.f32.mrb[19].mxu0 }
 0x68a   :  { %v2247_v57 = vadd.f32 %v2599_v25, %v2246_v31  ;;  %3048 = vmatprep.mubr.f32.mxu1 %v2307_v61 }
 0x68b   :  { %3049 = vmatmul.mubr.f32.gmra.mrb[28].mxu1 %v2308_v3  ;;  %v2310_v48 = vmax.f32 %v2252_v18, 0.0 }
 0x68c   :  { %v2309_v58 = vmax.f32 %v2247_v57, 0.0  ;;  %v3000_v42 = vpop.f32.mrb[20].mxu0 }
 0x68d   :  { %v2262_v62 = vadd.f32 %v3000_v42, %v2599_v25  ;;  %v2256_v63 = vpop.f32.mrb[21].mxu0 }
 0x68e   :  { %v2257_v7 = vadd.f32 %v2599_v25, %v2256_v63  ;;  %3051 = vmatprep.mubr.f32.mxu1 %v2309_v58 }
 0x68f   :  { %3052 = vmatmul.mubr.f32.gmra.mrb[30].mxu1 %v2310_v48  ;;  %v2312_v56 = vmax.f32 %v2262_v62, 0.0 }
 0x690   :  { %v2311_v24 = vmax.f32 %v2257_v7, 0.0  ;;  %v3003_v34 = vpop.f32.mrb[22].mxu0 }
 0x691   :  { %v2272_v55 = vadd.f32 %v3003_v34, %v2599_v25  ;;  %v2266_v10 = vpop.f32.mrb[23].mxu0 }
 0x692   :  { %v2267_v12 = vadd.f32 %v2599_v25, %v2266_v10  ;;  %3054 = vmatprep.mubr.f32.mxu1 %v2311_v24 }
 0x693   :  { %3055 = vmatmul.mubr.f32.gmra.mrb[32].mxu1 %v2312_v56  ;;  %v2314_v35 = vmax.f32 %v2272_v55, 0.0 }
 0x694   :  { %v2313_v53 = vmax.f32 %v2267_v12, 0.0  ;;  %v3006_v14 = vpop.f32.mrb[24].mxu0 }
 0x695   :  { %v2282_v59 = vadd.f32 %v3006_v14, %v2599_v25  ;;  %v2276_v41 = vpop.f32.mrb[25].mxu0 }
 0x696   :  { %v2277_v16 = vadd.f32 %v2599_v25, %v2276_v41  ;;  %3057 = vmatprep.mubr.f32.mxu1 %v2313_v53 }
 0x697   :  { %3058 = vmatmul.mubr.f32.gmra.mrb[34].mxu1 %v2314_v35  ;;  %v2316_v19 = vmax.f32 %v2282_v59, 0.0 }
 0x698   :  { %v2315_v33 = vmax.f32 %v2277_v16, 0.0  ;;  %v3009_v36 = vpop.f32.mrb[26].mxu0 }
 0x699   :  { %v2292_v2 = vadd.f32 %v3009_v36, %v2599_v25  ;;  %v2286_v23 = vpop.f32.mrb[27].mxu0 }
 0x69a   :  { %v2287_v5 = vadd.f32 %v2599_v25, %v2286_v23  ;;  %3060 = vmatprep.mubr.f32.mxu1 %v2315_v33 }
 0x69b   :  { %3061 = vmatmul.mubr.f32.gmra.mrb[36].mxu1 %v2316_v19  ;;  %v2318_v28 = vmax.f32 %v2292_v2, 0.0 }
 0x69c   :  { %v2317_v26 = vmax.f32 %v2287_v5, 0.0  ;;  %v3012_v27 = vpop.f32.mrb[28].mxu0 }
 0x69d   :  { %v2302_v20 = vadd.f32 %v3012_v27, %v2599_v25  ;;  %v2296_v8 = vpop.f32.mrb[29].mxu0 }
 0x69e   :  { %v2297_v44 = vadd.f32 %v2599_v25, %v2296_v8  ;;  %3063 = vmatprep.mubr.f32.mxu1 %v2317_v26 }
 0x69f   :  { %3064 = vmatmul.mubr.f32.gmra.mrb[38].mxu1 %v2318_v28  ;;  %v2320_v32 = vmax.f32 %v2302_v20, 0.0 }
 0x6a0   :  { %v2319_v9 = vmax.f32 %v2297_v44, 0.0 }
 0x6a2   :  { %3066 = vmatprep.mubr.f32.mxu1 %v2319_v9 }
 0x6a3   :  { %3067 = vmatmul.mubr.f32.gmra.mrb[40].mxu1 %v2320_v32 }
 0x75a   :  { %v3047_v47 = vpop.f32.mrb[26].mxu1 }
 0x75b   :  { %v2416_v38 = vadd.f32 %v3047_v47, %v2600_v37  ;;  %v2410_v11 = vpop.f32.mrb[27].mxu1 }
 0x75c   :  { %v2411_v40 = vadd.f32 %v2600_v37, %v2410_v11 }
 0x75d   :  { %2490 = vst [vmem:[%s3931_s13 + $0x8] sm:$0xff] %v2416_v38 }
 0x75e   :  { %2489 = vst [vmem:[%s3931_s13] sm:$0xff] %v2411_v40  ;;  %v3050_v6 = vpop.f32.mrb[28].mxu1 }
 0x75f   :  { %v2426_v13 = vadd.f32 %v3050_v6, %v2600_v37  ;;  %v2420_v54 = vpop.f32.mrb[29].mxu1 }
 0x760   :  { %v2421_v4 = vadd.f32 %v2600_v37, %v2420_v54 }
 0x761   :  { %2492 = vst [vmem:[%s3931_s13 + $0x18] sm:$0xff] %v2426_v13 }
 0x762   :  { %2491 = vst [vmem:[%s3931_s13 + $0x10] sm:$0xff] %v2421_v4  ;;  %v3053_v43 = vpop.f32.mrb[30].mxu1 }
 0x763   :  { %v2436_v21 = vadd.f32 %v3053_v43, %v2600_v37  ;;  %v2430_v45 = vpop.f32.mrb[31].mxu1 }
 0x764   :  { %v2431_v51 = vadd.f32 %v2600_v37, %v2430_v45 }
 0x765   :  { %2494 = vst [vmem:[%s3931_s13 + $0x28] sm:$0xff] %v2436_v21 }
 0x766   :  { %2493 = vst [vmem:[%s3931_s13 + $0x20] sm:$0xff] %v2431_v51  ;;  %v3056_v46 = vpop.f32.mrb[32].mxu1 }
 0x767   :  { %v2446_v17 = vadd.f32 %v3056_v46, %v2600_v37  ;;  %v2440_v25 = vpop.f32.mrb[33].mxu1 }
 0x768   :  { %v2441_v29 = vadd.f32 %v2600_v37, %v2440_v25 }
 0x769   :  { %2496 = vst [vmem:[%s3931_s13 + $0x38] sm:$0xff] %v2446_v17 }
 0x76a   :  { %2495 = vst [vmem:[%s3931_s13 + $0x30] sm:$0xff] %v2441_v29  ;;  %v3059_v0 = vpop.f32.mrb[34].mxu1 }
 0x76b   :  { %v2456_v1 = vadd.f32 %v3059_v0, %v2600_v37  ;;  %v2450_v30 = vpop.f32.mrb[35].mxu1 }
 0x76c   :  { %v2451_v52 = vadd.f32 %v2600_v37, %v2450_v30 }
 0x76d   :  { %2498 = vst [vmem:[%s3931_s13 + $0x48] sm:$0xff] %v2456_v1 }
 0x76e   :  { %2497 = vst [vmem:[%s3931_s13 + $0x40] sm:$0xff] %v2451_v52  ;;  %v3062_v60 = vpop.f32.mrb[36].mxu1 }
 0x76f   :  { %v2466_v49 = vadd.f32 %v3062_v60, %v2600_v37  ;;  %v2460_v50 = vpop.f32.mrb[37].mxu1 }
 0x770   :  { %v2461_v39 = vadd.f32 %v2600_v37, %v2460_v50 }
 0x771   :  { %2500 = vst [vmem:[%s3931_s13 + $0x58] sm:$0xff] %v2466_v49 }
 0x772   :  { %2499 = vst [vmem:[%s3931_s13 + $0x50] sm:$0xff] %v2461_v39  ;;  %v3065_v22 = vpop.f32.mrb[38].mxu1 }
 0x773   :  { %v2476_v61 = vadd.f32 %v3065_v22, %v2600_v37  ;;  %v2470_v15 = vpop.f32.mrb[39].mxu1 }
 0x774   :  { %v2471_v3 = vadd.f32 %v2600_v37, %v2470_v15 }
 0x775   :  { %2502 = vst [vmem:[%s3931_s13 + $0x68] sm:$0xff] %v2476_v61 }
 0x776   :  { %2501 = vst [vmem:[%s3931_s13 + $0x60] sm:$0xff] %v2471_v3  ;;  %v3068_v18 = vpop.f32.mrb[40].mxu1 }
 0x777   :  { %v2486_v31 = vadd.f32 %v3068_v18, %v2600_v37  ;;  %v2480_v57 = vpop.f32.mrb[41].mxu1 }
 0x778   :  { %v2481_v58 = vadd.f32 %v2600_v37, %v2480_v57 }
 0x779   :  { %2504 = vst [vmem:[%s3931_s13 + $0x78] sm:$0xff] %v2486_v31 }
 0x77a   :  { %2503 = vst [vmem:[%s3931_s13 + $0x70] sm:$0xff] %v2481_v58 }

</bundles_post_ra>
